<compile_context>
chip_gen: v6e
topology: v6e:2x2x1
jax: 0.10.0
libtpu: 0.0.40
codegen_flags: <defaults>
</compile_context>

<pallas_src>
import functools

import jax
import jax.numpy as jnp
from jax import lax
from jax.experimental import pallas as pl
from jax.experimental.pallas import tpu as pltpu


def _layernorm(x, gamma, beta, eps=1e-5):
    mu = jnp.mean(x, axis=-1, keepdims=True)
    var = jnp.mean((x - mu) ** 2, axis=-1, keepdims=True)
    return (x - mu) * lax.rsqrt(var + eps) * gamma + beta


def cross_attn_kernel(trg_ref, src_ref,
                      wq_ref, wkv_ref, bq_ref, bkv_ref,
                      wo_ref, bo_ref,
                      g1_ref, be1_ref,
                      w1_ref, b1_ref, w2_ref, b2_ref,
                      g2_ref, be2_ref,
                      out_ref, ctx_ref,
                      *, n_heads, bg, Lq, Lk, fuse_kv):
    trg = trg_ref[...]                       # (bg*Lq, E) f32
    src = src_ref[...]                       # (bg*Lk, E) f32
    E = trg.shape[-1]
    H = n_heads
    dh = E // H

    trg16 = trg.astype(jnp.bfloat16)
    src16 = src.astype(jnp.bfloat16)

    # ---- projections (MXU: bf16 operands, f32 accumulation).  The 1/sqrt(dh)
    # scale is already folded into wq / bq by pack_params. ----
    q = jnp.dot(trg16, wq_ref[...], preferred_element_type=jnp.float32) + bq_ref[...]
    if fuse_kv:
        # (E, 2E) fused K|V weight; split is lane-tile aligned (E % 128 == 0).
        kv = jnp.dot(src16, wkv_ref[...], preferred_element_type=jnp.float32) + bkv_ref[...]
        k, v = kv[:, :E], kv[:, E:]
    else:
        # Separate lane-aligned K and V matmuls (E not 128-aligned).
        k = jnp.dot(src16, wkv_ref[0], preferred_element_type=jnp.float32) + bkv_ref[0]
        v = jnp.dot(src16, wkv_ref[1], preferred_element_type=jnp.float32) + bkv_ref[1]

    q3 = q.astype(jnp.bfloat16).reshape(bg, Lq, E)
    k3 = k.astype(jnp.bfloat16).reshape(bg, Lk, E)
    v3 = v.astype(jnp.bfloat16).reshape(bg, Lk, E)

    # ---- scaled dot-product attention: per-head loop (H small & static),
    # each head one bg-batched matmul pair (leading batch dim).  Context is
    # written straight into a bf16 VMEM scratch slab. ----
    for h in range(H):
        sl = slice(h * dh, (h + 1) * dh)
        qh, kh, vh = q3[:, :, sl], k3[:, :, sl], v3[:, :, sl]
        s = jnp.einsum('bqd,bkd->bqk', qh, kh,
                       preferred_element_type=jnp.float32)        # (bg, Lq, Lk) f32
        m = jnp.max(s, axis=-1, keepdims=True)
        p = jnp.exp(s - m)
        # approx reciprocal is safe: max-subtraction guarantees denom >= 1
        p = p * pl.reciprocal(jnp.sum(p, axis=-1, keepdims=True), approx=True)
        ctx_h = jnp.einsum('bqk,bkd->bqd', p.astype(jnp.bfloat16), vh,
                           preferred_element_type=jnp.float32)    # (bg, Lq, dh)
        ctx_ref[:, sl] = ctx_h.astype(jnp.bfloat16).reshape(bg * Lq, dh)

    # ---- output projection + residual + LayerNorm 1 (dropout = identity) ----
    attn_out = jnp.dot(ctx_ref[...], wo_ref[...],
                       preferred_element_type=jnp.float32) + bo_ref[...]
    x1 = _layernorm(trg + attn_out, g1_ref[...], be1_ref[...])

    # ---- position-wise feed-forward (ReLU); intermediate kept bf16 ----
    h1 = jnp.maximum(
        jnp.dot(x1.astype(jnp.bfloat16), w1_ref[...],
                preferred_element_type=jnp.float32) + b1_ref[...],
        0.0).astype(jnp.bfloat16)
    ff = jnp.dot(h1, w2_ref[...], preferred_element_type=jnp.float32) + b2_ref[...]

    # ---- residual + LayerNorm 2 ----
    # TODO(synk): key_padding_mask / attn_mask are not supported (the PyTorch
    # layer is called without masks in this network).
    out_ref[...] = _layernorm(x1 + ff, g2_ref[...], be2_ref[...])


def pack_params(params, n_heads):
    """One-time weight packing: bf16 MXU weights, 1/sqrt(dh) folded into the
    Q projection, K|V fused only when lane-tile aligned.  Call once, reuse."""
    E = params['wq'].shape[0]
    dh = E // n_heads
    scale = 1.0 / float(dh) ** 0.5
    fuse_kv = (E % 128 == 0)
    if fuse_kv:
        wkv = jnp.concatenate([params['wk'], params['wv']], axis=1).astype(jnp.bfloat16)
        bkv = jnp.concatenate([params['bk'], params['bv']], axis=1).astype(jnp.float32)
    else:
        wkv = jnp.stack([params['wk'], params['wv']], axis=0).astype(jnp.bfloat16)
        bkv = jnp.stack([params['bk'], params['bv']], axis=0).astype(jnp.float32)
    weights = [
        (params['wq'] * scale).astype(jnp.bfloat16),   # wq  (scale folded)
        wkv,                                           # wkv
        (params['bq'] * scale).astype(jnp.float32),    # bq  (scale folded)
        bkv,                                           # bkv
        params['wo'].astype(jnp.bfloat16),             # wo
        params['bo'].astype(jnp.float32),              # bo
        params['g1'].astype(jnp.float32),
        params['be1'].astype(jnp.float32),
        params['w1'].astype(jnp.bfloat16),
        params['b1'].astype(jnp.float32),
        params['w2'].astype(jnp.bfloat16),
        params['b2'].astype(jnp.float32),
        params['g2'].astype(jnp.float32),
        params['be2'].astype(jnp.float32),
    ]
    return {'n_heads': int(n_heads), 'fuse_kv': fuse_kv,
            'pf_dim': int(params['w1'].shape[1]), 'weights': weights}


def _vmem_capacity_bytes():
    try:
        return int(pltpu.get_tpu_info().vmem_capacity_bytes)
    except Exception:
        return 64 * 1024 * 1024     # conservative (v7x-sized) default


def cross_attention_layer(trg, src, packed):
    B, Lq, E = trg.shape
    _, Lk, _ = src.shape
    H = packed['n_heads']
    P = packed['pf_dim']
    dh = E // H

    phys_vmem = _vmem_capacity_bytes()
    # 512-row blocks on 128 MiB VMEM parts (v5e/v6e), 256 otherwise (v7x 64 MiB).
    target_rows = 512 if phys_vmem >= (96 << 20) else 256

    # Fold batches into the matmul M dimension.
    bg = max(1, min(B, target_rows // max(Lq, 1)))
    if B >= 2:
        bg = min(bg, B // 2)        # >= 2 grid steps so v7x's 2nd TC gets work
    # (8,128) block constraint: row block must be sublane aligned unless it
    # spans the whole array.
    if (bg * Lq) % 8 or (bg * Lk) % 8:
        bg = B

    n_steps = -(-B // bg)
    B_pad = n_steps * bg
    if B_pad != B:                   # pad awkward batch sizes; tail rows discarded
        trg = jnp.pad(trg, ((0, B_pad - B), (0, 0), (0, 0)))
        src = jnp.pad(src, ((0, B_pad - B), (0, 0), (0, 0)))

    trg2d = trg.reshape(B_pad * Lq, E)
    src2d = src.reshape(B_pad * Lk, E)

    weights = packed['weights']
    # Grid-invariant weights: whole-array VMEM residency (single copy, no
    # double-buffering, no per-step re-DMA).
    weight_specs = [pl.BlockSpec(memory_space=pltpu.MemorySpace.VMEM)
                    for _ in weights]

    kernel = functools.partial(cross_attn_kernel, n_heads=H, bg=bg,
                               Lq=Lq, Lk=Lk, fuse_kv=packed['fuse_kv'])

    flops = (2 * B_pad * Lq * E * E           # Q projection
             + 4 * B_pad * Lk * E * E         # K and V projections
             + 4 * B_pad * H * Lq * Lk * dh   # scores + context
             + 2 * B_pad * Lq * E * E         # output projection
             + 4 * B_pad * Lq * E * P)        # FFN
    transcendentals = B_pad * H * Lq * Lk + 4 * B_pad * Lq
    weight_bytes = sum(int(w.size) * jnp.dtype(w.dtype).itemsize for w in weights)
    bytes_accessed = (trg2d.size + src2d.size + B_pad * Lq * E) * 4 + weight_bytes

    # VMEM budget: double-buffered activation blocks + single-copy weights,
    # with headroom; capped well inside physical capacity.
    block_bytes = 2 * 4 * (bg * Lq * E * 2 + bg * Lk * E)
    vmem_limit = max(32 << 20, weight_bytes + 4 * block_bytes + (8 << 20))
    vmem_limit = min(vmem_limit, int(phys_vmem * 3 // 4))

    out2d = pl.pallas_call(
        kernel,
        out_shape=jax.ShapeDtypeStruct((B_pad * Lq, E), jnp.float32),
        grid_spec=pltpu.PrefetchScalarGridSpec(
            num_scalar_prefetch=0,
            grid=(n_steps,),
            in_specs=[pl.BlockSpec((bg * Lq, E), lambda i: (i, 0)),
                      pl.BlockSpec((bg * Lk, E), lambda i: (i, 0))] + weight_specs,
            out_specs=pl.BlockSpec((bg * Lq, E), lambda i: (i, 0)),
            scratch_shapes=[pltpu.VMEM((bg * Lq, E), jnp.bfloat16)],   # ctx slab
        ),
        compiler_params=pltpu.CompilerParams(
            dimension_semantics=("parallel",),
            vmem_limit_bytes=int(vmem_limit)),
        cost_estimate=pl.CostEstimate(flops=int(flops),
                                      transcendentals=int(transcendentals),
                                      bytes_accessed=int(bytes_accessed)),
    )(trg2d, src2d, *weights)

    # TODO(synk): for production shapes with E < 128, repack the output store
    # as a lane-dense (rows*E/128, 128) slab to avoid masked partial-lane vst.
    return out2d[:B * Lq].reshape(B, Lq, E)


# -------------------- pure-JAX f32 reference (mirrors PyTorch semantics) --------------------
def reference(trg, src, params, n_heads):
    B, Lq, E = trg.shape
    Lk = src.shape[1]
    dh = E // n_heads
    scale = 1.0 / (dh ** 0.5)

    def ln(x, g, b):
        mu = x.mean(-1, keepdims=True)
        var = ((x - mu) ** 2).mean(-1, keepdims=True)
        return (x - mu) / jnp.sqrt(var + 1e-5) * g + b

    q = trg @ params['wq'] + params['bq']
    k = src @ params['wk'] + params['bk']
    v = src @ params['wv'] + params['bv']
    qh = q.reshape(B, Lq, n_heads, dh)
    kh = k.reshape(B, Lk, n_heads, dh)
    vh = v.reshape(B, Lk, n_heads, dh)
    s = jnp.einsum('bqhd,bkhd->bhqk', qh, kh) * scale
    a = jax.nn.softmax(s, axis=-1)
    ctx = jnp.einsum('bhqk,bkhd->bqhd', a, vh).reshape(B, Lq, E)
    attn_out = ctx @ params['wo'] + params['bo']
    x1 = ln(trg + attn_out, params['g1'], params['be1'])
    h = jax.nn.relu(x1 @ params['w1'] + params['b1'])
    ff = h @ params['w2'] + params['b2']
    return ln(x1 + ff, params['g2'], params['be2'])


def make_params(key, hidden_dim, n_heads, pf_dim):
    ks = jax.random.split(key, 12)
    E, P = hidden_dim, pf_dim
    s = 0.1
    # nn.MultiheadAttention: in_proj_weight (3E,E) split into Wq/Wk/Wv; out_proj (E,E).
    # Stored here already transposed (so kernels compute x @ W + b).
    return {
        'wq': jax.random.normal(ks[0], (E, E), jnp.float32) * s,
        'wk': jax.random.normal(ks[1], (E, E), jnp.float32) * s,
        'wv': jax.random.normal(ks[2], (E, E), jnp.float32) * s,
        'bq': jax.random.normal(ks[3], (1, E), jnp.float32) * s,
        'bk': jax.random.normal(ks[4], (1, E), jnp.float32) * s,
        'bv': jax.random.normal(ks[5], (1, E), jnp.float32) * s,
        'wo': jax.random.normal(ks[6], (E, E), jnp.float32) * s,
        'bo': jax.random.normal(ks[7], (1, E), jnp.float32) * s,
        'g1': jnp.ones((1, E), jnp.float32),
        'be1': jnp.zeros((1, E), jnp.float32),
        'w1': jax.random.normal(ks[8], (E, P), jnp.float32) * s,
        'b1': jax.random.normal(ks[9], (1, P), jnp.float32) * s,
        'w2': jax.random.normal(ks[10], (P, E), jnp.float32) * s,
        'b2': jax.random.normal(ks[11], (1, E), jnp.float32) * s,
        'g2': jnp.ones((1, E), jnp.float32),
        'be2': jnp.zeros((1, E), jnp.float32),
    }


if __name__ == "__main__":
    B, Lq, Lk = 2, 8, 8
    hidden_dim, n_heads, pf_dim = 32, 4, 64

    key = jax.random.PRNGKey(0)
    k_trg, k_src, k_par = jax.random.split(key, 3)
    trg = jax.random.normal(k_trg, (B, Lq, hidden_dim), jnp.float32)
    src = jax.random.normal(k_src, (B, Lk, hidden_dim), jnp.float32)
    params = make_params(k_par, hidden_dim, n_heads, pf_dim)

    packed = pack_params(params, n_heads)      # one-time weight packing (hoisted)
    out = cross_attention_layer(trg, src, packed)
    out = jax.block_until_ready(out)

    ref = reference(trg, src, params, n_heads)
    assert out.shape == (B, Lq, hidden_dim)
    # bf16 MXU operands (f32 accumulation) + approx softmax reciprocal ->
    # compare against the f32 reference with a loosened tolerance.
    assert jnp.allclose(out, ref, rtol=3e-2, atol=3e-2), "mismatch vs pure-JAX reference"

    print("KERNEL_OK")
</pallas_src>

<mosaic_0001>
module attributes {stable_mosaic.version = 11 : i64} {
  func.func @cross_attn_kernel(%arg0: i32, %arg1: memref<8x32xf32, #tpu.memory_space<vmem>>, %arg2: memref<8x32xf32, #tpu.memory_space<vmem>>, %arg3: memref<32x32xbf16, #tpu.memory_space<vmem>>, %arg4: memref<2x32x32xbf16, #tpu.memory_space<vmem>>, %arg5: memref<1x32xf32, #tpu.memory_space<vmem>>, %arg6: memref<2x1x32xf32, #tpu.memory_space<vmem>>, %arg7: memref<32x32xbf16, #tpu.memory_space<vmem>>, %arg8: memref<1x32xf32, #tpu.memory_space<vmem>>, %arg9: memref<1x32xf32, #tpu.memory_space<vmem>>, %arg10: memref<1x32xf32, #tpu.memory_space<vmem>>, %arg11: memref<32x64xbf16, #tpu.memory_space<vmem>>, %arg12: memref<1x64xf32, #tpu.memory_space<vmem>>, %arg13: memref<64x32xbf16, #tpu.memory_space<vmem>>, %arg14: memref<1x32xf32, #tpu.memory_space<vmem>>, %arg15: memref<1x32xf32, #tpu.memory_space<vmem>>, %arg16: memref<1x32xf32, #tpu.memory_space<vmem>>, %arg17: memref<8x32xf32, #tpu.memory_space<vmem>>, %arg18: memref<8x32xbf16, #tpu.memory_space<vmem>>) attributes {dimension_semantics = [#tpu.dimension_semantics<parallel>], iteration_bounds = array<i64: 2>, scalar_prefetch = 0 : i64, scratch_operands = 1 : i64, tpu.core_type = #tpu.core_type<tc>, window_params = [{transform_indices = @transform_0, window_bounds = array<i64: 8, 32>}, {transform_indices = @transform_1, window_bounds = array<i64: 8, 32>}, {pipeline_mode = #tpu.pipeline_mode<synchronous>, transform_indices = @transform_2, window_bounds = array<i64: 32, 32>}, {pipeline_mode = #tpu.pipeline_mode<synchronous>, transform_indices = @transform_3, window_bounds = array<i64: 2, 32, 32>}, {pipeline_mode = #tpu.pipeline_mode<synchronous>, transform_indices = @transform_4, window_bounds = array<i64: 1, 32>}, {pipeline_mode = #tpu.pipeline_mode<synchronous>, transform_indices = @transform_5, window_bounds = array<i64: 2, 1, 32>}, {pipeline_mode = #tpu.pipeline_mode<synchronous>, transform_indices = @transform_6, window_bounds = array<i64: 32, 32>}, {pipeline_mode = #tpu.pipeline_mode<synchronous>, transform_indices = @transform_7, window_bounds = array<i64: 1, 32>}, {pipeline_mode = #tpu.pipeline_mode<synchronous>, transform_indices = @transform_8, window_bounds = array<i64: 1, 32>}, {pipeline_mode = #tpu.pipeline_mode<synchronous>, transform_indices = @transform_9, window_bounds = array<i64: 1, 32>}, {pipeline_mode = #tpu.pipeline_mode<synchronous>, transform_indices = @transform_10, window_bounds = array<i64: 32, 64>}, {pipeline_mode = #tpu.pipeline_mode<synchronous>, transform_indices = @transform_11, window_bounds = array<i64: 1, 64>}, {pipeline_mode = #tpu.pipeline_mode<synchronous>, transform_indices = @transform_12, window_bounds = array<i64: 64, 32>}, {pipeline_mode = #tpu.pipeline_mode<synchronous>, transform_indices = @transform_13, window_bounds = array<i64: 1, 32>}, {pipeline_mode = #tpu.pipeline_mode<synchronous>, transform_indices = @transform_14, window_bounds = array<i64: 1, 32>}, {pipeline_mode = #tpu.pipeline_mode<synchronous>, transform_indices = @transform_15, window_bounds = array<i64: 1, 32>}, {transform_indices = @transform_16, window_bounds = array<i64: 8, 32>}]} {
    %c0 = arith.constant 0 : index
    %c0_0 = arith.constant 0 : index
    %0 = vector.load %arg1[%c0, %c0_0] : memref<8x32xf32, #tpu.memory_space<vmem>>, vector<8x32xf32>
    %c0_1 = arith.constant 0 : index
    %c0_2 = arith.constant 0 : index
    %1 = vector.load %arg2[%c0_1, %c0_2] : memref<8x32xf32, #tpu.memory_space<vmem>>, vector<8x32xf32>
    %2 = arith.truncf %0 : vector<8x32xf32> to vector<8x32xbf16>
    %3 = arith.truncf %1 : vector<8x32xf32> to vector<8x32xbf16>
    %c0_3 = arith.constant 0 : index
    %c0_4 = arith.constant 0 : index
    %4 = vector.load %arg3[%c0_3, %c0_4] : memref<32x32xbf16, #tpu.memory_space<vmem>>, vector<32x32xbf16>
    %cst = arith.constant dense<0.000000e+00> : vector<8x32xf32>
    %5 = tpu.matmul %2, %4, %cst {dimension_numbers = #tpu.dot_dimension_numbers<[1], [0], [0], [1], [0, 0, 1, 1], [], []>} : vector<8x32xbf16>, vector<32x32xbf16>, vector<8x32xf32> -> vector<8x32xf32>
    %c0_5 = arith.constant 0 : index
    %c0_6 = arith.constant 0 : index
    %6 = vector.load %arg5[%c0_5, %c0_6] : memref<1x32xf32, #tpu.memory_space<vmem>>, vector<1x32xf32>
    %7 = vector.broadcast %6 : vector<1x32xf32> to vector<8x32xf32>
    %8 = arith.addf %5, %7 : vector<8x32xf32>
    %c0_7 = arith.constant 0 : index
    %c0_8 = arith.constant 0 : index
    %c0_9 = arith.constant 0 : index
    %9 = vector.load %arg4[%c0_7, %c0_8, %c0_9] : memref<2x32x32xbf16, #tpu.memory_space<vmem>>, vector<1x32x32xbf16>
    %10 = vector.shape_cast %9 : vector<1x32x32xbf16> to vector<32x32xbf16>
    %cst_10 = arith.constant dense<0.000000e+00> : vector<8x32xf32>
    %11 = tpu.matmul %3, %10, %cst_10 {dimension_numbers = #tpu.dot_dimension_numbers<[1], [0], [0], [1], [0, 0, 1, 1], [], []>} : vector<8x32xbf16>, vector<32x32xbf16>, vector<8x32xf32> -> vector<8x32xf32>
    %c0_11 = arith.constant 0 : index
    %c0_12 = arith.constant 0 : index
    %c0_13 = arith.constant 0 : index
    %12 = vector.load %arg6[%c0_11, %c0_12, %c0_13] : memref<2x1x32xf32, #tpu.memory_space<vmem>>, vector<1x1x32xf32>
    %13 = vector.shape_cast %12 : vector<1x1x32xf32> to vector<1x32xf32>
    %14 = vector.broadcast %13 : vector<1x32xf32> to vector<8x32xf32>
    %15 = arith.addf %11, %14 : vector<8x32xf32>
    %c1 = arith.constant 1 : index
    %c0_14 = arith.constant 0 : index
    %c0_15 = arith.constant 0 : index
    %16 = vector.load %arg4[%c1, %c0_14, %c0_15] : memref<2x32x32xbf16, #tpu.memory_space<vmem>>, vector<1x32x32xbf16>
    %17 = vector.shape_cast %16 : vector<1x32x32xbf16> to vector<32x32xbf16>
    %cst_16 = arith.constant dense<0.000000e+00> : vector<8x32xf32>
    %18 = tpu.matmul %3, %17, %cst_16 {dimension_numbers = #tpu.dot_dimension_numbers<[1], [0], [0], [1], [0, 0, 1, 1], [], []>} : vector<8x32xbf16>, vector<32x32xbf16>, vector<8x32xf32> -> vector<8x32xf32>
    %c1_17 = arith.constant 1 : index
    %c0_18 = arith.constant 0 : index
    %c0_19 = arith.constant 0 : index
    %19 = vector.load %arg6[%c1_17, %c0_18, %c0_19] : memref<2x1x32xf32, #tpu.memory_space<vmem>>, vector<1x1x32xf32>
    %20 = vector.shape_cast %19 : vector<1x1x32xf32> to vector<1x32xf32>
    %21 = vector.broadcast %20 : vector<1x32xf32> to vector<8x32xf32>
    %22 = arith.addf %18, %21 : vector<8x32xf32>
    %23 = arith.truncf %8 : vector<8x32xf32> to vector<8x32xbf16>
    %24 = vector.shape_cast %23 : vector<8x32xbf16> to vector<1x8x32xbf16>
    %25 = arith.truncf %15 : vector<8x32xf32> to vector<8x32xbf16>
    %26 = vector.shape_cast %25 : vector<8x32xbf16> to vector<1x8x32xbf16>
    %27 = arith.truncf %22 : vector<8x32xf32> to vector<8x32xbf16>
    %28 = vector.shape_cast %27 : vector<8x32xbf16> to vector<1x8x32xbf16>
    %29 = vector.extract_strided_slice %24 {offsets = [0, 0, 0], sizes = [1, 8, 8], strides = [1, 1, 1]} : vector<1x8x32xbf16> to vector<1x8x8xbf16>
    %30 = vector.extract_strided_slice %26 {offsets = [0, 0, 0], sizes = [1, 8, 8], strides = [1, 1, 1]} : vector<1x8x32xbf16> to vector<1x8x8xbf16>
    %31 = vector.extract_strided_slice %28 {offsets = [0, 0, 0], sizes = [1, 8, 8], strides = [1, 1, 1]} : vector<1x8x32xbf16> to vector<1x8x8xbf16>
    "tpu.trace_start"() <{level = 10 : i32, message = "bqd,bkd->bqk"}> : () -> ()
    %cst_20 = arith.constant dense<0.000000e+00> : vector<1x8x8xf32>
    %32 = tpu.matmul %29, %30, %cst_20 {dimension_numbers = #tpu.dot_dimension_numbers<[2], [2], [1], [1], [0, 0, 0, 1, 1, 1], [0], [0]>} : vector<1x8x8xbf16>, vector<1x8x8xbf16>, vector<1x8x8xf32> -> vector<1x8x8xf32>
    "tpu.trace_stop"() : () -> ()
    %cst_21 = arith.constant dense<0xFF800000> : vector<1x8xf32>
    %33 = vector.multi_reduction <maximumf>, %32, %cst_21 [2] : vector<1x8x8xf32> to vector<1x8xf32>
    %34 = vector.shape_cast %33 : vector<1x8xf32> to vector<1x8x1xf32>
    %35 = vector.broadcast %34 : vector<1x8x1xf32> to vector<1x8x8xf32>
    %36 = arith.subf %32, %35 : vector<1x8x8xf32>
    %37 = math.exp %36 : vector<1x8x8xf32>
    %cst_22 = arith.constant dense<0.000000e+00> : vector<1x8xf32>
    %38 = vector.multi_reduction <add>, %37, %cst_22 [2] : vector<1x8x8xf32> to vector<1x8xf32>
    %39 = vector.shape_cast %38 : vector<1x8xf32> to vector<1x8x1xf32>
    %40 = tpu.reciprocal %39 {approx = true} : vector<1x8x1xf32> -> vector<1x8x1xf32>
    %41 = vector.broadcast %40 : vector<1x8x1xf32> to vector<1x8x8xf32>
    %42 = arith.mulf %37, %41 : vector<1x8x8xf32>
    %43 = arith.truncf %42 : vector<1x8x8xf32> to vector<1x8x8xbf16>
    "tpu.trace_start"() <{level = 10 : i32, message = "bqk,bkd->bqd"}> : () -> ()
    %cst_23 = arith.constant dense<0.000000e+00> : vector<1x8x8xf32>
    %44 = tpu.matmul %43, %31, %cst_23 {dimension_numbers = #tpu.dot_dimension_numbers<[2], [1], [1], [2], [0, 0, 0, 1, 1, 2], [0], [0]>} : vector<1x8x8xbf16>, vector<1x8x8xbf16>, vector<1x8x8xf32> -> vector<1x8x8xf32>
    "tpu.trace_stop"() : () -> ()
    %45 = arith.truncf %44 : vector<1x8x8xf32> to vector<1x8x8xbf16>
    %46 = vector.shape_cast %45 : vector<1x8x8xbf16> to vector<8x8xbf16>
    %c0_24 = arith.constant 0 : index
    %c0_25 = arith.constant 0 : index
    %47 = vector.load %arg18[%c0_24, %c0_25] : memref<8x32xbf16, #tpu.memory_space<vmem>>, vector<8x8xbf16>
    tpu.vector_store %arg18[%c0_24, %c0_25], %46 {strides = array<i32>} : memref<8x32xbf16, #tpu.memory_space<vmem>>, vector<8x8xbf16>,
    %48 = vector.extract_strided_slice %24 {offsets = [0, 0, 8], sizes = [1, 8, 8], strides = [1, 1, 1]} : vector<1x8x32xbf16> to vector<1x8x8xbf16>
    %49 = vector.extract_strided_slice %26 {offsets = [0, 0, 8], sizes = [1, 8, 8], strides = [1, 1, 1]} : vector<1x8x32xbf16> to vector<1x8x8xbf16>
    %50 = vector.extract_strided_slice %28 {offsets = [0, 0, 8], sizes = [1, 8, 8], strides = [1, 1, 1]} : vector<1x8x32xbf16> to vector<1x8x8xbf16>
    "tpu.trace_start"() <{level = 10 : i32, message = "bqd,bkd->bqk"}> : () -> ()
    %cst_26 = arith.constant dense<0.000000e+00> : vector<1x8x8xf32>
    %51 = tpu.matmul %48, %49, %cst_26 {dimension_numbers = #tpu.dot_dimension_numbers<[2], [2], [1], [1], [0, 0, 0, 1, 1, 1], [0], [0]>} : vector<1x8x8xbf16>, vector<1x8x8xbf16>, vector<1x8x8xf32> -> vector<1x8x8xf32>
    "tpu.trace_stop"() : () -> ()
    %cst_27 = arith.constant dense<0xFF800000> : vector<1x8xf32>
    %52 = vector.multi_reduction <maximumf>, %51, %cst_27 [2] : vector<1x8x8xf32> to vector<1x8xf32>
    %53 = vector.shape_cast %52 : vector<1x8xf32> to vector<1x8x1xf32>
    %54 = vector.broadcast %53 : vector<1x8x1xf32> to vector<1x8x8xf32>
    %55 = arith.subf %51, %54 : vector<1x8x8xf32>
    %56 = math.exp %55 : vector<1x8x8xf32>
    %cst_28 = arith.constant dense<0.000000e+00> : vector<1x8xf32>
    %57 = vector.multi_reduction <add>, %56, %cst_28 [2] : vector<1x8x8xf32> to vector<1x8xf32>
    %58 = vector.shape_cast %57 : vector<1x8xf32> to vector<1x8x1xf32>
    %59 = tpu.reciprocal %58 {approx = true} : vector<1x8x1xf32> -> vector<1x8x1xf32>
    %60 = vector.broadcast %59 : vector<1x8x1xf32> to vector<1x8x8xf32>
    %61 = arith.mulf %56, %60 : vector<1x8x8xf32>
    %62 = arith.truncf %61 : vector<1x8x8xf32> to vector<1x8x8xbf16>
    "tpu.trace_start"() <{level = 10 : i32, message = "bqk,bkd->bqd"}> : () -> ()
    %cst_29 = arith.constant dense<0.000000e+00> : vector<1x8x8xf32>
    %63 = tpu.matmul %62, %50, %cst_29 {dimension_numbers = #tpu.dot_dimension_numbers<[2], [1], [1], [2], [0, 0, 0, 1, 1, 2], [0], [0]>} : vector<1x8x8xbf16>, vector<1x8x8xbf16>, vector<1x8x8xf32> -> vector<1x8x8xf32>
    "tpu.trace_stop"() : () -> ()
    %64 = arith.truncf %63 : vector<1x8x8xf32> to vector<1x8x8xbf16>
    %65 = vector.shape_cast %64 : vector<1x8x8xbf16> to vector<8x8xbf16>
    %c0_30 = arith.constant 0 : index
    %c8 = arith.constant 8 : index
    %66 = vector.load %arg18[%c0_30, %c8] : memref<8x32xbf16, #tpu.memory_space<vmem>>, vector<8x8xbf16>
    tpu.vector_store %arg18[%c0_30, %c8], %65 {strides = array<i32>} : memref<8x32xbf16, #tpu.memory_space<vmem>>, vector<8x8xbf16>,
    %67 = vector.extract_strided_slice %24 {offsets = [0, 0, 16], sizes = [1, 8, 8], strides = [1, 1, 1]} : vector<1x8x32xbf16> to vector<1x8x8xbf16>
    %68 = vector.extract_strided_slice %26 {offsets = [0, 0, 16], sizes = [1, 8, 8], strides = [1, 1, 1]} : vector<1x8x32xbf16> to vector<1x8x8xbf16>
    %69 = vector.extract_strided_slice %28 {offsets = [0, 0, 16], sizes = [1, 8, 8], strides = [1, 1, 1]} : vector<1x8x32xbf16> to vector<1x8x8xbf16>
    "tpu.trace_start"() <{level = 10 : i32, message = "bqd,bkd->bqk"}> : () -> ()
    %cst_31 = arith.constant dense<0.000000e+00> : vector<1x8x8xf32>
    %70 = tpu.matmul %67, %68, %cst_31 {dimension_numbers = #tpu.dot_dimension_numbers<[2], [2], [1], [1], [0, 0, 0, 1, 1, 1], [0], [0]>} : vector<1x8x8xbf16>, vector<1x8x8xbf16>, vector<1x8x8xf32> -> vector<1x8x8xf32>
    "tpu.trace_stop"() : () -> ()
    %cst_32 = arith.constant dense<0xFF800000> : vector<1x8xf32>
    %71 = vector.multi_reduction <maximumf>, %70, %cst_32 [2] : vector<1x8x8xf32> to vector<1x8xf32>
    %72 = vector.shape_cast %71 : vector<1x8xf32> to vector<1x8x1xf32>
    %73 = vector.broadcast %72 : vector<1x8x1xf32> to vector<1x8x8xf32>
    %74 = arith.subf %70, %73 : vector<1x8x8xf32>
    %75 = math.exp %74 : vector<1x8x8xf32>
    %cst_33 = arith.constant dense<0.000000e+00> : vector<1x8xf32>
    %76 = vector.multi_reduction <add>, %75, %cst_33 [2] : vector<1x8x8xf32> to vector<1x8xf32>
    %77 = vector.shape_cast %76 : vector<1x8xf32> to vector<1x8x1xf32>
    %78 = tpu.reciprocal %77 {approx = true} : vector<1x8x1xf32> -> vector<1x8x1xf32>
    %79 = vector.broadcast %78 : vector<1x8x1xf32> to vector<1x8x8xf32>
    %80 = arith.mulf %75, %79 : vector<1x8x8xf32>
    %81 = arith.truncf %80 : vector<1x8x8xf32> to vector<1x8x8xbf16>
    "tpu.trace_start"() <{level = 10 : i32, message = "bqk,bkd->bqd"}> : () -> ()
    %cst_34 = arith.constant dense<0.000000e+00> : vector<1x8x8xf32>
    %82 = tpu.matmul %81, %69, %cst_34 {dimension_numbers = #tpu.dot_dimension_numbers<[2], [1], [1], [2], [0, 0, 0, 1, 1, 2], [0], [0]>} : vector<1x8x8xbf16>, vector<1x8x8xbf16>, vector<1x8x8xf32> -> vector<1x8x8xf32>
    "tpu.trace_stop"() : () -> ()
    %83 = arith.truncf %82 : vector<1x8x8xf32> to vector<1x8x8xbf16>
    %84 = vector.shape_cast %83 : vector<1x8x8xbf16> to vector<8x8xbf16>
    %c0_35 = arith.constant 0 : index
    %c16 = arith.constant 16 : index
    %85 = vector.load %arg18[%c0_35, %c16] : memref<8x32xbf16, #tpu.memory_space<vmem>>, vector<8x8xbf16>
    tpu.vector_store %arg18[%c0_35, %c16], %84 {strides = array<i32>} : memref<8x32xbf16, #tpu.memory_space<vmem>>, vector<8x8xbf16>,
    %86 = vector.extract_strided_slice %24 {offsets = [0, 0, 24], sizes = [1, 8, 8], strides = [1, 1, 1]} : vector<1x8x32xbf16> to vector<1x8x8xbf16>
    %87 = vector.extract_strided_slice %26 {offsets = [0, 0, 24], sizes = [1, 8, 8], strides = [1, 1, 1]} : vector<1x8x32xbf16> to vector<1x8x8xbf16>
    %88 = vector.extract_strided_slice %28 {offsets = [0, 0, 24], sizes = [1, 8, 8], strides = [1, 1, 1]} : vector<1x8x32xbf16> to vector<1x8x8xbf16>
    "tpu.trace_start"() <{level = 10 : i32, message = "bqd,bkd->bqk"}> : () -> ()
    %cst_36 = arith.constant dense<0.000000e+00> : vector<1x8x8xf32>
    %89 = tpu.matmul %86, %87, %cst_36 {dimension_numbers = #tpu.dot_dimension_numbers<[2], [2], [1], [1], [0, 0, 0, 1, 1, 1], [0], [0]>} : vector<1x8x8xbf16>, vector<1x8x8xbf16>, vector<1x8x8xf32> -> vector<1x8x8xf32>
    "tpu.trace_stop"() : () -> ()
    %cst_37 = arith.constant dense<0xFF800000> : vector<1x8xf32>
    %90 = vector.multi_reduction <maximumf>, %89, %cst_37 [2] : vector<1x8x8xf32> to vector<1x8xf32>
    %91 = vector.shape_cast %90 : vector<1x8xf32> to vector<1x8x1xf32>
    %92 = vector.broadcast %91 : vector<1x8x1xf32> to vector<1x8x8xf32>
    %93 = arith.subf %89, %92 : vector<1x8x8xf32>
    %94 = math.exp %93 : vector<1x8x8xf32>
    %cst_38 = arith.constant dense<0.000000e+00> : vector<1x8xf32>
    %95 = vector.multi_reduction <add>, %94, %cst_38 [2] : vector<1x8x8xf32> to vector<1x8xf32>
    %96 = vector.shape_cast %95 : vector<1x8xf32> to vector<1x8x1xf32>
    %97 = tpu.reciprocal %96 {approx = true} : vector<1x8x1xf32> -> vector<1x8x1xf32>
    %98 = vector.broadcast %97 : vector<1x8x1xf32> to vector<1x8x8xf32>
    %99 = arith.mulf %94, %98 : vector<1x8x8xf32>
    %100 = arith.truncf %99 : vector<1x8x8xf32> to vector<1x8x8xbf16>
    "tpu.trace_start"() <{level = 10 : i32, message = "bqk,bkd->bqd"}> : () -> ()
    %cst_39 = arith.constant dense<0.000000e+00> : vector<1x8x8xf32>
    %101 = tpu.matmul %100, %88, %cst_39 {dimension_numbers = #tpu.dot_dimension_numbers<[2], [1], [1], [2], [0, 0, 0, 1, 1, 2], [0], [0]>} : vector<1x8x8xbf16>, vector<1x8x8xbf16>, vector<1x8x8xf32> -> vector<1x8x8xf32>
    "tpu.trace_stop"() : () -> ()
    %102 = arith.truncf %101 : vector<1x8x8xf32> to vector<1x8x8xbf16>
    %103 = vector.shape_cast %102 : vector<1x8x8xbf16> to vector<8x8xbf16>
    %c0_40 = arith.constant 0 : index
    %c24 = arith.constant 24 : index
    %104 = vector.load %arg18[%c0_40, %c24] : memref<8x32xbf16, #tpu.memory_space<vmem>>, vector<8x8xbf16>
    tpu.vector_store %arg18[%c0_40, %c24], %103 {strides = array<i32>} : memref<8x32xbf16, #tpu.memory_space<vmem>>, vector<8x8xbf16>,
    %c0_41 = arith.constant 0 : index
    %c0_42 = arith.constant 0 : index
    %105 = vector.load %arg18[%c0_41, %c0_42] : memref<8x32xbf16, #tpu.memory_space<vmem>>, vector<8x32xbf16>
    %c0_43 = arith.constant 0 : index
    %c0_44 = arith.constant 0 : index
    %106 = vector.load %arg7[%c0_43, %c0_44] : memref<32x32xbf16, #tpu.memory_space<vmem>>, vector<32x32xbf16>
    %cst_45 = arith.constant dense<0.000000e+00> : vector<8x32xf32>
    %107 = tpu.matmul %105, %106, %cst_45 {dimension_numbers = #tpu.dot_dimension_numbers<[1], [0], [0], [1], [0, 0, 1, 1], [], []>} : vector<8x32xbf16>, vector<32x32xbf16>, vector<8x32xf32> -> vector<8x32xf32>
    %c0_46 = arith.constant 0 : index
    %c0_47 = arith.constant 0 : index
    %108 = vector.load %arg8[%c0_46, %c0_47] : memref<1x32xf32, #tpu.memory_space<vmem>>, vector<1x32xf32>
    %109 = vector.broadcast %108 : vector<1x32xf32> to vector<8x32xf32>
    %110 = arith.addf %107, %109 : vector<8x32xf32>
    %111 = arith.addf %0, %110 : vector<8x32xf32>
    %c0_48 = arith.constant 0 : index
    %c0_49 = arith.constant 0 : index
    %112 = vector.load %arg9[%c0_48, %c0_49] : memref<1x32xf32, #tpu.memory_space<vmem>>, vector<1x32xf32>
    %c0_50 = arith.constant 0 : index
    %c0_51 = arith.constant 0 : index
    %113 = vector.load %arg10[%c0_50, %c0_51] : memref<1x32xf32, #tpu.memory_space<vmem>>, vector<1x32xf32>
    %cst_52 = arith.constant dense<0.000000e+00> : vector<8xf32>
    %114 = vector.multi_reduction <add>, %111, %cst_52 [1] : vector<8x32xf32> to vector<8xf32>
    %115 = vector.shape_cast %114 : vector<8xf32> to vector<8x1xf32>
    %cst_53 = arith.constant 3.200000e+01 : f32
    %116 = vector.broadcast %cst_53 : f32 to vector<8x1xf32>
    %117 = arith.divf %115, %116 : vector<8x1xf32>
    %118 = vector.broadcast %117 : vector<8x1xf32> to vector<8x32xf32>
    %119 = arith.subf %111, %118 : vector<8x32xf32>
    %120 = arith.mulf %119, %119 : vector<8x32xf32>
    %cst_54 = arith.constant dense<0.000000e+00> : vector<8xf32>
    %121 = vector.multi_reduction <add>, %120, %cst_54 [1] : vector<8x32xf32> to vector<8xf32>
    %122 = vector.shape_cast %121 : vector<8xf32> to vector<8x1xf32>
    %cst_55 = arith.constant 3.200000e+01 : f32
    %123 = vector.broadcast %cst_55 : f32 to vector<8x1xf32>
    %124 = arith.divf %122, %123 : vector<8x1xf32>
    %125 = vector.broadcast %117 : vector<8x1xf32> to vector<8x32xf32>
    %126 = arith.subf %111, %125 : vector<8x32xf32>
    %cst_56 = arith.constant 9.99999974E-6 : f32
    %127 = vector.broadcast %cst_56 : f32 to vector<8x1xf32>
    %128 = arith.addf %124, %127 : vector<8x1xf32>
    %129 = math.rsqrt %128 : vector<8x1xf32>
    %130 = vector.broadcast %129 : vector<8x1xf32> to vector<8x32xf32>
    %131 = arith.mulf %126, %130 : vector<8x32xf32>
    %132 = vector.broadcast %112 : vector<1x32xf32> to vector<8x32xf32>
    %133 = arith.mulf %131, %132 : vector<8x32xf32>
    %134 = vector.broadcast %113 : vector<1x32xf32> to vector<8x32xf32>
    %135 = arith.addf %133, %134 : vector<8x32xf32>
    %136 = arith.truncf %135 : vector<8x32xf32> to vector<8x32xbf16>
    %c0_57 = arith.constant 0 : index
    %c0_58 = arith.constant 0 : index
    %137 = vector.load %arg11[%c0_57, %c0_58] : memref<32x64xbf16, #tpu.memory_space<vmem>>, vector<32x64xbf16>
    %cst_59 = arith.constant dense<0.000000e+00> : vector<8x64xf32>
    %138 = tpu.matmul %136, %137, %cst_59 {dimension_numbers = #tpu.dot_dimension_numbers<[1], [0], [0], [1], [0, 0, 1, 1], [], []>} : vector<8x32xbf16>, vector<32x64xbf16>, vector<8x64xf32> -> vector<8x64xf32>
    %c0_60 = arith.constant 0 : index
    %c0_61 = arith.constant 0 : index
    %139 = vector.load %arg12[%c0_60, %c0_61] : memref<1x64xf32, #tpu.memory_space<vmem>>, vector<1x64xf32>
    %140 = vector.broadcast %139 : vector<1x64xf32> to vector<8x64xf32>
    %141 = arith.addf %138, %140 : vector<8x64xf32>
    %cst_62 = arith.constant 0.000000e+00 : f32
    %142 = vector.broadcast %cst_62 : f32 to vector<8x64xf32>
    %143 = arith.maximumf %141, %142 : vector<8x64xf32>
    %144 = arith.truncf %143 : vector<8x64xf32> to vector<8x64xbf16>
    %c0_63 = arith.constant 0 : index
    %c0_64 = arith.constant 0 : index
    %145 = vector.load %arg13[%c0_63, %c0_64] : memref<64x32xbf16, #tpu.memory_space<vmem>>, vector<64x32xbf16>
    %cst_65 = arith.constant dense<0.000000e+00> : vector<8x32xf32>
    %146 = tpu.matmul %144, %145, %cst_65 {dimension_numbers = #tpu.dot_dimension_numbers<[1], [0], [0], [1], [0, 0, 1, 1], [], []>} : vector<8x64xbf16>, vector<64x32xbf16>, vector<8x32xf32> -> vector<8x32xf32>
    %c0_66 = arith.constant 0 : index
    %c0_67 = arith.constant 0 : index
    %147 = vector.load %arg14[%c0_66, %c0_67] : memref<1x32xf32, #tpu.memory_space<vmem>>, vector<1x32xf32>
    %148 = vector.broadcast %147 : vector<1x32xf32> to vector<8x32xf32>
    %149 = arith.addf %146, %148 : vector<8x32xf32>
    %150 = arith.addf %135, %149 : vector<8x32xf32>
    %c0_68 = arith.constant 0 : index
    %c0_69 = arith.constant 0 : index
    %151 = vector.load %arg15[%c0_68, %c0_69] : memref<1x32xf32, #tpu.memory_space<vmem>>, vector<1x32xf32>
    %c0_70 = arith.constant 0 : index
    %c0_71 = arith.constant 0 : index
    %152 = vector.load %arg16[%c0_70, %c0_71] : memref<1x32xf32, #tpu.memory_space<vmem>>, vector<1x32xf32>
    %cst_72 = arith.constant dense<0.000000e+00> : vector<8xf32>
    %153 = vector.multi_reduction <add>, %150, %cst_72 [1] : vector<8x32xf32> to vector<8xf32>
    %154 = vector.shape_cast %153 : vector<8xf32> to vector<8x1xf32>
    %cst_73 = arith.constant 3.200000e+01 : f32
    %155 = vector.broadcast %cst_73 : f32 to vector<8x1xf32>
    %156 = arith.divf %154, %155 : vector<8x1xf32>
    %157 = vector.broadcast %156 : vector<8x1xf32> to vector<8x32xf32>
    %158 = arith.subf %150, %157 : vector<8x32xf32>
    %159 = arith.mulf %158, %158 : vector<8x32xf32>
    %cst_74 = arith.constant dense<0.000000e+00> : vector<8xf32>
    %160 = vector.multi_reduction <add>, %159, %cst_74 [1] : vector<8x32xf32> to vector<8xf32>
    %161 = vector.shape_cast %160 : vector<8xf32> to vector<8x1xf32>
    %cst_75 = arith.constant 3.200000e+01 : f32
    %162 = vector.broadcast %cst_75 : f32 to vector<8x1xf32>
    %163 = arith.divf %161, %162 : vector<8x1xf32>
    %164 = vector.broadcast %156 : vector<8x1xf32> to vector<8x32xf32>
    %165 = arith.subf %150, %164 : vector<8x32xf32>
    %cst_76 = arith.constant 9.99999974E-6 : f32
    %166 = vector.broadcast %cst_76 : f32 to vector<8x1xf32>
    %167 = arith.addf %163, %166 : vector<8x1xf32>
    %168 = math.rsqrt %167 : vector<8x1xf32>
    %169 = vector.broadcast %168 : vector<8x1xf32> to vector<8x32xf32>
    %170 = arith.mulf %165, %169 : vector<8x32xf32>
    %171 = vector.broadcast %151 : vector<1x32xf32> to vector<8x32xf32>
    %172 = arith.mulf %170, %171 : vector<8x32xf32>
    %173 = vector.broadcast %152 : vector<1x32xf32> to vector<8x32xf32>
    %174 = arith.addf %172, %173 : vector<8x32xf32>
    %c0_77 = arith.constant 0 : index
    %c0_78 = arith.constant 0 : index
    %175 = vector.load %arg17[%c0_77, %c0_78] : memref<8x32xf32, #tpu.memory_space<vmem>>, vector<8x32xf32>
    tpu.vector_store %arg17[%c0_77, %c0_78], %174 {strides = array<i32>} : memref<8x32xf32, #tpu.memory_space<vmem>>, vector<8x32xf32>,
    return
  }
  func.func @transform_0(%arg0: i32) -> (i32, i32) {
    %c0_i32 = arith.constant 0 : i32
    %c0_i32_0 = arith.constant 0 : i32
    return %arg0, %c0_i32 : i32, i32
  }
  func.func @transform_1(%arg0: i32) -> (i32, i32) {
    %c0_i32 = arith.constant 0 : i32
    %c0_i32_0 = arith.constant 0 : i32
    return %arg0, %c0_i32 : i32, i32
  }
  func.func @transform_2(%arg0: i32) -> (i32, i32) {
    %c0_i32 = arith.constant 0 : i32
    %c0_i32_0 = arith.constant 0 : i32
    %c0_i32_1 = arith.constant 0 : i32
    return %c0_i32, %c0_i32_0 : i32, i32
  }
  func.func @transform_3(%arg0: i32) -> (i32, i32, i32) {
    %c0_i32 = arith.constant 0 : i32
    %c0_i32_0 = arith.constant 0 : i32
    %c0_i32_1 = arith.constant 0 : i32
    %c0_i32_2 = arith.constant 0 : i32
    return %c0_i32, %c0_i32_0, %c0_i32_1 : i32, i32, i32
  }
  func.func @transform_4(%arg0: i32) -> (i32, i32) {
    %c0_i32 = arith.constant 0 : i32
    %c0_i32_0 = arith.constant 0 : i32
    %c0_i32_1 = arith.constant 0 : i32
    return %c0_i32, %c0_i32_0 : i32, i32
  }
  func.func @transform_5(%arg0: i32) -> (i32, i32, i32) {
    %c0_i32 = arith.constant 0 : i32
    %c0_i32_0 = arith.constant 0 : i32
    %c0_i32_1 = arith.constant 0 : i32
    %c0_i32_2 = arith.constant 0 : i32
    return %c0_i32, %c0_i32_0, %c0_i32_1 : i32, i32, i32
  }
  func.func @transform_6(%arg0: i32) -> (i32, i32) {
    %c0_i32 = arith.constant 0 : i32
    %c0_i32_0 = arith.constant 0 : i32
    %c0_i32_1 = arith.constant 0 : i32
    return %c0_i32, %c0_i32_0 : i32, i32
  }
  func.func @transform_7(%arg0: i32) -> (i32, i32) {
    %c0_i32 = arith.constant 0 : i32
    %c0_i32_0 = arith.constant 0 : i32
    %c0_i32_1 = arith.constant 0 : i32
    return %c0_i32, %c0_i32_0 : i32, i32
  }
  func.func @transform_8(%arg0: i32) -> (i32, i32) {
    %c0_i32 = arith.constant 0 : i32
    %c0_i32_0 = arith.constant 0 : i32
    %c0_i32_1 = arith.constant 0 : i32
    return %c0_i32, %c0_i32_0 : i32, i32
  }
  func.func @transform_9(%arg0: i32) -> (i32, i32) {
    %c0_i32 = arith.constant 0 : i32
    %c0_i32_0 = arith.constant 0 : i32
    %c0_i32_1 = arith.constant 0 : i32
    return %c0_i32, %c0_i32_0 : i32, i32
  }
  func.func @transform_10(%arg0: i32) -> (i32, i32) {
    %c0_i32 = arith.constant 0 : i32
    %c0_i32_0 = arith.constant 0 : i32
    %c0_i32_1 = arith.constant 0 : i32
    return %c0_i32, %c0_i32_0 : i32, i32
  }
  func.func @transform_11(%arg0: i32) -> (i32, i32) {
    %c0_i32 = arith.constant 0 : i32
    %c0_i32_0 = arith.constant 0 : i32
    %c0_i32_1 = arith.constant 0 : i32
    return %c0_i32, %c0_i32_0 : i32, i32
  }
  func.func @transform_12(%arg0: i32) -> (i32, i32) {
    %c0_i32 = arith.constant 0 : i32
    %c0_i32_0 = arith.constant 0 : i32
    %c0_i32_1 = arith.constant 0 : i32
    return %c0_i32, %c0_i32_0 : i32, i32
  }
  func.func @transform_13(%arg0: i32) -> (i32, i32) {
    %c0_i32 = arith.constant 0 : i32
    %c0_i32_0 = arith.constant 0 : i32
    %c0_i32_1 = arith.constant 0 : i32
    return %c0_i32, %c0_i32_0 : i32, i32
  }
  func.func @transform_14(%arg0: i32) -> (i32, i32) {
    %c0_i32 = arith.constant 0 : i32
    %c0_i32_0 = arith.constant 0 : i32
    %c0_i32_1 = arith.constant 0 : i32
    return %c0_i32, %c0_i32_0 : i32, i32
  }
  func.func @transform_15(%arg0: i32) -> (i32, i32) {
    %c0_i32 = arith.constant 0 : i32
    %c0_i32_0 = arith.constant 0 : i32
    %c0_i32_1 = arith.constant 0 : i32
    return %c0_i32, %c0_i32_0 : i32, i32
  }
  func.func @transform_16(%arg0: i32) -> (i32, i32) {
    %c0_i32 = arith.constant 0 : i32
    %c0_i32_0 = arith.constant 0 : i32
    return %arg0, %c0_i32 : i32, i32
  }
}

</mosaic_0001>

<bundles_post_ra>
// kernel: tpu_custom_call.1
= control target key start
LH: loop header
LB: loop body
LE: loop exit
PB: predicated region body
PF: predicated region fallthrough
CT: control target
= control target key end

     0   :  { %s2916_s0 = inlined_call_operand.vmem [shape: f32[16,32], index: 0, kind: input, shape index: {}]   ;;  %s2917_s1 = inlined_call_operand.hbm [shape: f32[16,32], index: 1, kind: input, shape index: {}]   ;;  %s2918_s2 = inlined_call_operand.hbm [shape: bf16[32,32], index: 2, kind: input, shape index: {}]   ;;  %s2919_s3 = inlined_call_operand.vmem [shape: bf16[2,32,32], index: 3, kind: input, shape index: {}]   ;;  %s2920_s4 = inlined_call_operand.hbm [shape: f32[1,32], index: 4, kind: input, shape index: {}]   ;;  %s2921_s5 = inlined_call_operand.hbm [shape: f32[2,1,32], index: 5, kind: input, shape index: {}]   ;;  %s2922_s6 = inlined_call_operand.hbm [shape: bf16[32,32], index: 6, kind: input, shape index: {}]   ;;  %s2923_s7 = inlined_call_operand.hbm [shape: f32[1,32], index: 7, kind: input, shape index: {}]   ;;  %s2924_s8 = inlined_call_operand.hbm [shape: f32[1,32], index: 8, kind: input, shape index: {}]   ;;  %s2925_s9 = inlined_call_operand.hbm [shape: f32[1,32], index: 9, kind: input, shape index: {}]   ;;  %s2926_s10 = inlined_call_operand.vmem [shape: bf16[32,64], index: 10, kind: input, shape index: {}]   ;;  %s2927_s11 = inlined_call_operand.vmem [shape: f32[1,64], index: 11, kind: input, shape index: {}]   ;;  %s2928_s12 = inlined_call_operand.vmem [shape: bf16[64,32], index: 12, kind: input, shape index: {}]   ;;  %s2929_s13 = inlined_call_operand.vmem [shape: f32[1,32], index: 13, kind: input, shape index: {}]   ;;  %s2930_s14 = inlined_call_operand.vmem [shape: f32[1,32], index: 14, kind: input, shape index: {}]   ;;  %s2931_s15 = inlined_call_operand.vmem [shape: f32[1,32], index: 15, kind: input, shape index: {}]   ;;  %s2932_s16 = inlined_call_operand.hbm [shape: f32[16,32], index: 16, kind: output, shape index: {}]  }
   0x1   :  { %2940 = sst [smem:[#allocation24_spill]] %s2916_s0 }
   0x2   :  { %2941 = sst [smem:[#allocation25_spill]] %s2918_s2 }
   0x3   :  { %2942 = sst [smem:[#allocation26_spill]] %s2920_s4 }
   0x4   :  { %2943 = sst [smem:[#allocation27_spill]] %s2921_s5 }
   0x5   :  { %2944 = sst [smem:[#allocation28_spill]] %s2922_s6 }
   0x6   :  { %2945 = sst [smem:[#allocation29_spill]] %s2923_s7 }
   0x7   :  { %2946 = sst [smem:[#allocation30_spill]] %s2924_s8 }
   0x8   :  { %2947 = sst [smem:[#allocation31_spill]] %s2925_s9 }
   0x9   :  { %2948 = sst [smem:[#allocation32_spill]] %s2930_s14 }
   0xa   :  { %2949 = sst [smem:[#allocation33_spill]] %s2931_s15 }
   0xb   :  { %2950 = sst [smem:[#allocation34_spill]] %s2932_s16 }
   0xc   :  { %21 = vsyncpa [#allocation4], 0 }
   0xd   :  { %23 = vsyncpa [#allocation4 + $0x1], 0 }
   0xe   :  { %24 = vsyncpa [#allocation7], 0 }
   0xf   :  { %25 = vsyncpa [#allocation10], 0 }
  0x10   :  { %26 = vsyncpa [#allocation13], 0 }
  0x11   :  { %27 = vsyncpa [#allocation16], 0 }
  0x12   :  { %28 = vsyncpa [#allocation5], 0 }
  0x13   :  { %30 = vsyncpa [#allocation5 + $0x1], 0  ;;  %s2539_s21 = smov 0   ;;  %s2541_s22 = smov 0  }
  0x14   :  { %s2543_s23 = smov 0   ;;  %s2545_s24 = smov 0  }
  0x15 LB: > { %s2433_s25 = smov [#allocation6]   ;;  %s2560_s27 = sadd.s32 4294967295, %s2431_s24   ;;  %s2431_s24 = sphi %s2545_s24, %s2988_s24   ;;  %s2427_s23 = sphi %s2543_s23, %s2987_s23   ;;  %s2423_s22 = sphi %s2541_s22, %s2986_s22   ;;  %s2419_s21 = sphi %s2539_s21, %s2985_s21  }
  0x16   : > { %s425_s26 = sshll.u32 %s2433_s25, 4  ;;  %p1768_p0 = scmp.ge.s32.totalorder %s2431_s24, 1  ;;  %s426_s26 = int_to_ptr.vmem [resolvable:$true] %s425_s26 }
  0x17   : > { %p2936_p1 = scmp.eq.s32.totalorder %s2560_s27, 0  ;;  %p413_p2 = scmp.lt.s32.totalorder %s2431_s24, 3 }
  0x18   : > { %s2434_s29 = smov [#allocation9]   ;;  %s2435_s17 = smov [#allocation12]  }
  0x19   : > { %p2565_p3 = pnand %p1768_p0, %p413_p2  ;;  %s452_s30 = sshll.u32 %s2434_s29, 4  ;;  %s2578_s30 = int_to_ptr.vmem [resolvable:$true] %s452_s30 }
  0x1a   : > { %s2580_s18 = sshll.u32 %s2435_s17, 4  ;;  %s2152_s20 = scalar_lea.vmem %s426_s26, 256  ;;  %s480_s18 = int_to_ptr.vmem [resolvable:$true] %s2580_s18 }
  0x1b   : > { %s2951_s28 = scalar_select %p2565_p3, 1, 0 }
  0x1c   : > { %p2010_p5 = pneg %p2565_p3  ;;  %p2153_p8 = scmp.ne.s32.totalorder %s426_s26, %s2152_s20 }
  0x1d   : > { %p2160_p11 = scmp.lt.s32.totalorder %s426_s26, %s426_s26  ;;  %p2161_p12 = scmp.lt.s32.totalorder %s2152_s20, %s2152_s20 }
  0x1e   : > { %p2574_p6 = pnand %p2010_p5, %p2936_p1 }
  0x1f   : > { %p2162_p13 = por %p2161_p12, %p2160_p11 }
  0x20   : > { %p2584_p7 = pneg %p2574_p6 }
  0x22   : > { %p2155_p9 = pnand %p2153_p8, %p2584_p7 }
  0x24   : > { %p2156_p10 = pneg %p2155_p9 }
  0x26   : > { %p2163_p0 = pnand %p2162_p13, %p2156_p10 }
  0x28   : > { %2166 = shalt.err (!%p2163_p0)
}
  0x29   : > { %s2934_s25 = smov 64   ;;  %s2935_s29 = smov 4  }
  0x2a   : > { %s2954_s2 = sld [smem:[#allocation25_spill]]  ;;  %s2178_s15 = scalar_lea.vmem %s2578_s30, 32 }
  0x2b   : > { %p2179_p2 = scmp.ne.s32.totalorder %s2578_s30, %s2178_s15  ;;  %p2186_p9 = scmp.lt.s32.totalorder %s2578_s30, %s2578_s30 }
  0x2c   : > { %p2187_p10 = scmp.lt.s32.totalorder %s2178_s15, %s2178_s15 }
  0x2d   : > { %p2181_p5 = pnand %p2179_p2, %p2584_p7 }
  0x2e   : > { %p2188_p11 = por %p2187_p10, %p2186_p9 }
  0x2f   : > { %p2182_p8 = pneg %p2181_p5 }
  0x30   : > { %2013 = dma.hbm_to_vmem [thread:$0]  (!%p2574_p6), %s2954_s2, 256, %s426_s26, [#allocation7], %s2934_s25, %s2934_s25, %s2935_s29  }
  0x31   : > { %p2189_p12 = pnand %p2188_p11, %p2182_p8 }
  0x33   : > { %2192 = shalt.err (!%p2189_p12)
}
  0x34   : > { %s2438_s20 = smov 16   ;;  %s2439_s14 = smov 1  }
  0x35   : > { %s2955_s5 = sld [smem:[#allocation27_spill]]  ;;  %s2204_s17 = scalar_lea.vmem %s480_s18, 16 }
  0x36   : > { %p2205_p13 = scmp.ne.s32.totalorder %s480_s18, %s2204_s17  ;;  %s2211_s15 = scalar_lea.vmem %s480_s18, 32 }
  0x37   : > { %p2212_p5 = scmp.lt.s32.totalorder %s480_s18, %s480_s18  ;;  %p2213_p8 = scmp.lt.s32.totalorder %s2211_s15, %s2204_s17 }
  0x38   : > { %p2207_p0 = pnand %p2205_p13, %p2584_p7 }
  0x39   : > { %p2214_p9 = por %p2213_p8, %p2212_p5 }
  0x3a   : > { %p2208_p2 = pneg %p2207_p0 }
  0x3b   : > { %2019 = dma.hbm_to_vmem [thread:$0]  (!%p2574_p6), %s2955_s5, 32, %s2578_s30, [#allocation10], %s2438_s20, %s2438_s20, %s2439_s14  }
  0x3c   : > { %p2215_p10 = pnand %p2214_p9, %p2208_p2 }
  0x3e   : > { %2218 = shalt.err (!%p2215_p10)
}
  0x3f   : > { %s2956_s7 = sld [smem:[#allocation29_spill]]  ;;  %s2440_s14 = smov [#allocation8]  }
  0x40   : > { %s442_s30 = sshll.u32 %s2440_s14, 4  ;;  %s2441_s20 = smov [#allocation11]   ;;  %s443_s30 = int_to_ptr.vmem [resolvable:$true] %s442_s30 }
  0x41   : > { %s465_s16 = sshll.u32 %s2441_s20, 4  ;;  %s2230_s26 = scalar_lea.vmem %s443_s30, 16  ;;  %s466_s16 = int_to_ptr.vmem [resolvable:$true] %s465_s16 }
  0x42   : > { %p2231_p11 = scmp.ne.s32.totalorder %s443_s30, %s2230_s26  ;;  %s2237_s17 = scalar_lea.vmem %s443_s30, 32 }
  0x43   : > { %p2238_p0 = scmp.lt.s32.totalorder %s443_s30, %s443_s30  ;;  %p2239_p2 = scmp.lt.s32.totalorder %s2237_s17, %s2230_s26 }
  0x44   : > { %p2233_p12 = pnand %p2231_p11, %p2584_p7 }
  0x45   : > { %2025 = dma.hbm_to_vmem [thread:$0]  (!%p2574_p6), %s2956_s7, 16, %s480_s18, [#allocation13]  }
  0x46   : > { %p2234_p13 = pneg %p2233_p12  ;;  %p2240_p5 = por %p2239_p2, %p2238_p0 }
  0x48   : > { %p2241_p8 = pnand %p2240_p5, %p2234_p13 }
  0x4a   : > { %2244 = shalt.err (!%p2241_p8)
}
  0x4b   : > { %s2957_s4 = sld [smem:[#allocation26_spill]]  ;;  %s2256_s29 = scalar_lea.vmem %s466_s16, 256 }
  0x4c   : > { %p2257_p9 = scmp.ne.s32.totalorder %s466_s16, %s2256_s29  ;;  %p2264_p12 = scmp.lt.s32.totalorder %s466_s16, %s466_s16 }
  0x4d   : > { %p2265_p4 = scmp.lt.s32.totalorder %s2256_s29, %s2256_s29 }
  0x4e   : > { %p2259_p10 = pnand %p2257_p9, %p2584_p7 }
  0x4f   : > { %p2266_p1 = por %p2265_p4, %p2264_p12 }
  0x50   : > { %p2260_p11 = pneg %p2259_p10 }
  0x51   : > { %2016 = dma.hbm_to_vmem [thread:$0]  (!%p2574_p6), %s2957_s4, 16, %s443_s30, [#allocation7]  }
  0x52   : > { %p2267_p3 = pnand %p2266_p1, %p2260_p11 }
  0x54   : > { %2270 = shalt.err (!%p2267_p3)
}
  0x55   : > { %s2958_s15 = smov 4   ;;  %s2959_s14 = smov 64  }
  0x56   : > { %s2960_s6 = sld [smem:[#allocation28_spill]]  ;;  %s2442_s30 = smov [#allocation14]  }
  0x57   : > { %s490_s17 = sshll.u32 %s2442_s30, 4  ;;  %s2443_s25 = smov [#allocation15]   ;;  %s491_s17 = int_to_ptr.vmem [resolvable:$true] %s490_s17 }
  0x58   : > { %s501_s18 = sshll.u32 %s2443_s25, 4  ;;  %s2282_s2 = scalar_lea.vmem %s491_s17, 16  ;;  %s502_s18 = int_to_ptr.vmem [resolvable:$true] %s501_s18 }
  0x59   : > { %p2283_p13 = scmp.ne.s32.totalorder %s491_s17, %s2282_s2  ;;  %s2289_s29 = scalar_lea.vmem %s491_s17, 32 }
  0x5a   : > { %p2290_p4 = scmp.lt.s32.totalorder %s491_s17, %s491_s17  ;;  %p2291_p0 = scmp.lt.s32.totalorder %s2289_s29, %s2282_s2 }
  0x5b   : > { %p2285_p1 = pnand %p2283_p13, %p2584_p7 }
  0x5c   : > { %2022 = dma.hbm_to_vmem [thread:$0]  (!%p2574_p6), %s2960_s6, 256, %s466_s16, [#allocation10], %s2959_s14, %s2959_s14, %s2958_s15  }
  0x5d   : > { %p2286_p3 = pneg %p2285_p1  ;;  %p2292_p2 = por %p2291_p0, %p2290_p4 }
  0x5f   : > { %p2293_p5 = pnand %p2292_p2, %p2286_p3 }
  0x61   : > { %2296 = shalt.err (!%p2293_p5)
}
  0x62   : > { %s2961_s8 = sld [smem:[#allocation30_spill]]  ;;  %s2308_s15 = scalar_lea.vmem %s502_s18, 16 }
  0x63   : > { %p2309_p8 = scmp.ne.s32.totalorder %s502_s18, %s2308_s15  ;;  %s2315_s14 = scalar_lea.vmem %s502_s18, 32 }
  0x64   : > { %p2316_p11 = scmp.lt.s32.totalorder %s502_s18, %s502_s18  ;;  %p2317_p12 = scmp.lt.s32.totalorder %s2315_s14, %s2308_s15 }
  0x65   : > { %p2311_p9 = pnand %p2309_p8, %p2584_p7 }
  0x66   : > { %p2318_p13 = por %p2317_p12, %p2316_p11 }
  0x67   : > { %p2312_p10 = pneg %p2311_p9 }
  0x68   : > { %2028 = dma.hbm_to_vmem [thread:$0]  (!%p2574_p6), %s2961_s8, 16, %s491_s17, [#allocation13]  }
  0x69   : > { %p2319_p1 = pnand %p2318_p13, %p2312_p10 }
  0x6b   : > { %2322 = shalt.err (!%p2319_p1)
}
  0x6c   : > { %s2962_s9 = sld [smem:[#allocation31_spill]]  ;;  %s1767_s19 = sadd.s32 4294967294, %s2431_s24  }
  0x6d   : > { %s2651_s0 = sadd.s32 1, %s2431_s24   ;;  %s69_s30 = sadd.s32 1, %s2427_s23 }
  0x6e   : > { %s66_s17 = ssub.s32 %s2431_s24, %s2651_s0  ;;  %p76_p7 = scmp.ne.s32.totalorder %s2427_s23, %s2423_s22 }
  0x6f   : > { %p67_p3 = scmp.eq.s32.totalorder %s66_s17, 0  ;;  %p77_p4 = scmp.eq.s32.totalorder %s2431_s24, 0 }
  0x70   : > { %p82_p0 = scmp.ne.s32.totalorder %s2423_s22, %s2419_s21  ;;  %p400_p2 = scmp.eq.s32.totalorder %s2560_s27, 1 }
  0x71   : > { %s2663_s25 = scalar_select %p67_p3, %s2427_s23, %s69_s30  }
  0x72   : > { %2031 = dma.hbm_to_vmem [thread:$0]  (!%p2574_p6), %s2962_s9, 16, %s502_s18, [#allocation16]  }
  0x73   : > { %p78_p5 = por %p77_p4, %p76_p7  ;;  %p2963_p8 = scmp.eq.s32.totalorder %s2560_s27, 0 }
  0x74   : > { %p2671_p6 = por %p400_p2, %p76_p7  ;;  %p406_p10 = scmp.eq.s32.totalorder %s1767_s19, 1 }
  0x75   : > { %p2667_p9 = por %p2963_p8, %p82_p0  ;;  %p2047_p11 = scmp.lt.s32.totalorder %s2431_s24, 2 }
  0x76   : > { %s2965_s18 = scalar_select %p2671_p6, 1, 0 }
  0x77   : > { %s2964_s29 = scalar_select %p2667_p9, 1, 0 }
  0x78   : > { %s537_s20 = sand.u32 1, %s2427_s23   ;;  %p2677_p12 = por %p406_p10, %p82_p0 }
  0x79   : > { %s1777_s15 = sshll.u32 %s537_s20, 3  ;;  %s1778_s14 = sshll.u32 %s2431_s24, 7 }
  0x7a   : > { %s2966_s16 = scalar_select %p2677_p12, 1, 0 }
  0x7b   : > { %s2685_s30 = scalar_lea.hbm %s2917_s1, %s1778_s14  ;;  %s541_s17 = scalar_lea.vmem [#allocation3], %s1777_s15 }
  0x7c   : > { %s548_s4 = sshll.u32 %s541_s17, 4  ;;  %p2687_p13 = pnand %p2047_p11, %p78_p5  ;;  %s549_s4 = int_to_ptr.vmem [resolvable:$true] %s548_s4 }
  0x7d   : > { %s538_s5 = scalar_lea.sflag [#allocation4], %s537_s20  ;;  %s2323_s6 = scalar_lea.hbm %s2685_s30, 128 }
  0x7e   : > { %p2324_p1 = scmp.ne.s32.totalorder %s2685_s30, %s2323_s6  ;;  %p2325_p7 = pneg %p2687_p13 }
  0x7f   : > { %s2328_s26 = scalar_lea.hbm %s2917_s1, 256  ;;  %p2329_p0 = scmp.lt.s32.totalorder %s2685_s30, %s2917_s1 }
  0x80   : > { %p2326_p3 = pnand %p2325_p7, %p2324_p1  ;;  %p2330_p2 = scmp.lt.s32.totalorder %s2328_s26, %s2323_s6 }
  0x82   : > { %p2327_p4 = pneg %p2326_p3  ;;  %p2331_p5 = por %p2330_p2, %p2329_p0 }
  0x84   : > { %p2332_p8 = pnand %p2331_p5, %p2327_p4 }
  0x86   : > { %2335 = shalt.err (!%p2332_p8)
}
  0x87   : > { %s2336_s17 = scalar_lea.vmem %s549_s4, 128  ;;  %s2444_s20 = smov [#allocation3]  }
  0x88   : > { %p2337_p10 = scmp.ne.s32.totalorder %s549_s4, %s2336_s17  ;;  %s2341_s8 = sshll.u32 %s2444_s20, 4  ;;  %s2342_s8 = int_to_ptr.vmem [resolvable:$false] %s2341_s8 }
  0x89   : > { %s2343_s9 = scalar_lea.vmem %s2342_s8, 256  ;;  %p2344_p1 = scmp.lt.s32.totalorder %s549_s4, %s2342_s8 }
  0x8a   : > { %p2339_p11 = pnand %p2337_p10, %p2325_p7  ;;  %p2345_p3 = scmp.lt.s32.totalorder %s2343_s9, %s2336_s17 }
  0x8c   : > { %p2340_p12 = pneg %p2339_p11  ;;  %p2346_p6 = por %p2345_p3, %p2344_p1 }
  0x8e   : > { %p2347_p9 = pnand %p2346_p6, %p2340_p12 }
  0x90   : > { %2350 = shalt.err (!%p2347_p9)
}
  0x91   : > { %2035 = dma.hbm_to_vmem [thread:$0]  (!%p2687_p13), %s2685_s30, 128, %s549_s4, %s538_s5  }
  0x92   : > { %p2968_p4 = scmp.ne.s32.totalorder %s2951_s28, 0 }
  0x93   : > { %s2708_s6 = sand.u32 (!%p2968_p4), 1, %s2423_s22   ;;  %p2969_p6 = scmp.ne.s32.totalorder (!%p2968_p4), %s2964_s29, 0 }
  0x94   : > { %557 = sbr.rel (%p2968_p4) target bundleno = 2562 (0xa02), region = 84  ;;  %s1780_s7 = sshll.u32 (!%p2968_p4), %s2708_s6, 3 }
  0x95   : > { %s560_s8 = scalar_lea.sflag (!%p2968_p4), [#allocation4], %s2708_s6  ;;  %s563_s9 = scalar_lea.vmem (!%p2968_p4), [#allocation3], %s1780_s7 }
  0x99   : > { %2394 = dma.done.wait (%p2969_p6), %s560_s8, 128  }
  0x9a   : > { %2396 = vsyncadd (%p2969_p6), %s560_s8, 4294967168  ;;  %p2970_p9 = scmp.eq.s32.totalorder %s2560_s27, 0 }
  0x9c   : > { %2398 = dma.done.wait (%p2970_p9), [#allocation7], 272   ;;  %p2971_p12 = pmov %p2970_p9 }
  0x9d   : > { %p2972_p13 = pmov %p2970_p9 }
  0x9e   : > { %2400 = vsyncadd (%p2971_p12), [#allocation7], 4294967024 }
  0x9f   : > { %2402 = dma.done.wait (%p2972_p13), [#allocation10], 288   ;;  %p2973_p7 = pmov %p2970_p9 }
  0xa1   : > { %2404 = vsyncadd (%p2973_p7), [#allocation10], 4294967008  ;;  %p2974_p0 = pmov %p2973_p7 }
  0xa3   : > { %2406 = dma.done.wait (%p2974_p0), [#allocation13], 32   ;;  %p2975_p2 = pmov %p2974_p0 }
  0xa4   : > { %p2976_p5 = pmov %p2974_p0 }
  0xa5   : > { %2408 = vsyncadd (%p2975_p2), [#allocation13], 4294967264 }
  0xa6   : > { %2410 = dma.done.wait (%p2976_p5), [#allocation16], 16   ;;  %p2977_p8 = pmov %p2974_p0 }
  0xa7   : > { %p644_p10 = scmp.lt.s32.totalorder %s2560_s27, 1  ;;  %v2445_v0 = vmov 0.0   ;;  %vm2446_vm0 = vmmov 0   ;;  %v2107_v1 = vld [vmem:[%s2919_s3 + $0x8] sm:$0xff]   ;;  %v2108_v2 = vld [vmem:[#allocation6 + $0x8] sm:$0xff]   ;;  %s2978_s14 = sld [smem:[#allocation24_spill]] }
  0xa8   : > { %2412 = vsyncadd (%p2977_p8), [#allocation16], 4294967280  ;;  %1886 = vmatprep.subr.bf16.mxu1 %v2445_v0  ;;  %1878 = vmatprep.subr.bf16.mxu0 %v2445_v0  ;;  %v2109_v3 = vld [vmem:[%s2919_s3] sm:$0xff]   ;;  %v2110_v4 = vld [vmem:[#allocation6] sm:$0xff]   ;;  %vm676_vm1 = vcmask 261120   ;;  %vm854_vm2 = vcmask 64512  }
  0xa9   : > { %1890 = vmatprep.mubr.msk.bf16.mxu1 %vm2446_vm0, %v2445_v0  ;;  %1882 = vmatprep.mubr.msk.bf16.mxu0 %vm2446_vm0, %v2445_v0  ;;  %s645_s4 = scalar_select %p644_p10, %s2560_s27, 1  ;;  %v650_v5 = vld [vmem:[%s563_s9] sm:$0xff]  ;;  %v2111_v24 = vld [vmem:[%s2919_s3 + $0x18] sm:$0xff]   ;;  %vm916_vm3 = vcmask 1043456   ;;  %vm961_vm4 = vcmask 60416   ;;  %vm1083_vm5 = vcmask 126016  }
  0xaa   : > { %1887 = vmatpush3.bf16.msra.mxu1 %v2107_v1  ;;  %1879 = vmatpush3.bf16.msra.mxu0 %v2108_v2  ;;  %v652_v7 = vpack.c.bf16 %v650_v5, %v650_v5  ;;  %v1794_v9 = vld [vmem:[#allocation9] ss:$0 sm:$0xff]  ;;  %v1790_v10 = vld [vmem:[#allocation8] ss:$0 sm:$0xff]  ;;  %s2447_s17 = smov 112   ;;  %s2448_s20 = smov 120  }
  0xab   : > { %s1789_s5 = sshll.u32 %s645_s4, 3  ;;  %1888 = vmatprep.subr.bf16.mxu1 %v2445_v0  ;;  %1880 = vmatprep.subr.bf16.mxu0 %v2445_v0  ;;  %s2449_s8 = smov 104   ;;  %v2112_v25 = vld [vmem:[%s2919_s3 + $0x10] sm:$0xff]   ;;  %v1802_v40 = vld [vmem:[#allocation9 + $0x1] ss:$0 sm:$0xff]  ;;  %vm1202_vm6 = vcmask 191616  }
  0xac   : > { %s2450_s29 = smov 8   ;;  %s2451_s30 = smov 16   ;;  %vm1321_vm7 = vcmask 257216   ;;  %vm1529_vm8 = vcmask 523264  }
  0xad   : > { %s647_s2 = scalar_lea.vmem %s2978_s14, %s1789_s5  ;;  %s2452_s19 = smov 24  }
  0xae   : > { %v2753_v6 = vld [vmem:[%s647_s2] sm:$0xff]  ;;  %1889 = vmatpush3.bf16.msra.mxu1 %v2109_v3  ;;  %1881 = vmatpush3.bf16.msra.mxu0 %v2110_v4  ;;  %s2980_s9 = sld [smem:[#allocation33_spill]]  ;;  %s1836_s4 = sshll.u32 %s2560_s27, 7 }
  0xaf   : > { %v651_v8 = vpack.c.bf16 %v2753_v6, %v2753_v6  ;;  %1902 = vmatprep.subr.bf16.mxu1 %v2445_v0  ;;  %1894 = vmatprep.subr.bf16.mxu0 %v2445_v0  ;;  %s643_s5 = scalar_lea.vmem [#allocation17], %s1780_s7  ;;  %s1605_s2 = scalar_lea.sflag [#allocation5], %s2708_s6 }
  0xb0   : > { %s1618_s28 = sshll.u32 %s643_s5, 4  ;;  %p2982_p1 = scmp.ne.s32.totalorder %s2965_s18, 0  ;;  %s1619_s28 = int_to_ptr.vmem [resolvable:$true] %s1618_s28 }
  0xb1   : > { %1891 = vmatmul.mubr.msk.bf16.vlgmr.msra.gmra.mxu1 %vm676_vm1, %v652_v7  ;;  %1883 = vmatmul.mubr.msk.bf16.vlgmr.msra.gmra.mxu0 %vm676_vm1, %v651_v8  ;;  %s2351_s26 = scalar_lea.vmem %s1619_s28, 128  ;;  %s2453_s15 = smov [#allocation17]  }
  0xb2   : > { %1904 = vmatprep.mubr.msk.bf16.mxu1 %vm2446_vm0, %v2445_v0  ;;  %1898 = vmatprep.mubr.msk.bf16.mxu0 %vm2446_vm0, %v2445_v0  ;;  %p2352_p11 = scmp.ne.s32.totalorder %s1619_s28, %s2351_s26  ;;  %s2355_s27 = sshll.u32 %s2453_s15, 4  ;;  %s2356_s27 = int_to_ptr.vmem [resolvable:$false] %s2355_s27 }
  0xb3   : > { %1895 = vmatpush3.bf16.msra.mxu0 %v2111_v24  ;;  %s2357_s7 = scalar_lea.vmem %s2356_s27, 256  ;;  %p2358_p6 = scmp.lt.s32.totalorder %s1619_s28, %s2356_s27 }
  0xb4   : > { %1896 = vmatprep.subr.bf16.mxu0 %v2445_v0  ;;  %p2353_p3 = pnand %p2352_p11, %p2982_p1  ;;  %p2359_p9 = scmp.lt.s32.totalorder %s2357_s7, %s2351_s26 }
  0xb6   : > { %p2354_p4 = pneg %p2353_p3  ;;  %p2360_p12 = por %p2359_p9, %p2358_p6 }
  0xb7   : > { %1897 = vmatpush3.bf16.msra.mxu0 %v2112_v25 }
  0xb8   : > { %1908 = vmatprep.subr.bf16.mxu0 %v2445_v0  ;;  %p2361_p13 = pnand %p2360_p12, %p2354_p4 }
  0xba   : > { %1899 = vmatmul.mubr.msk.bf16.vlgmr.msra.gmra.mxu0 %vm676_vm1, %v652_v7 }
  0xbb   : > { %1910 = vmatprep.mubr.msk.bf16.mxu0 %vm2446_vm0, %v2445_v0 }
 0x171   : > { %v780_v11 = vpop.f32.mrf.mxu1  ;;  %v714_v13 = vpop.f32.mrf.mxu0 }
 0x172   : > { %v781_v12 = vadd.f32 %v1794_v9, %v780_v11  ;;  %v715_v14 = vadd.f32 %v1790_v10, %v714_v13 }
 0x173   : > { %v1892_v15 = vpop.f32.mrf.mxu1  ;;  %v1884_v17 = vpop.f32.mrf.mxu0 }
 0x174   : > { %v852_v16 = vpack.c.bf16 %v781_v12, %v781_v12  ;;  %v851_v19 = vpack.c.bf16 %v715_v14, %v715_v14 }
 0x175   : > { %v783_v18 = vpop.f32.mrf.mxu1  ;;  %v717_v20 = vpop.f32.mrf.mxu0 }
 0x176   : > { %1087 = vrot.lane.b32.xlu1 %v852_v16, %s2447_s17  ;;  %967 = vrot.lane.b32.xlu0 %v852_v16, %s2448_s20  ;;  %v859_v21 = vsel %vm854_vm2, %v852_v16, 0 }
 0x177   : > { %v1893_v22 = vpop.f32.mrf.mxu1  ;;  %1903 = vmatpush3.bf16.xpose.msra.mxu1 %v859_v21  ;;  %v1885_v23 = vpop.f32.mrf.mxu0 }
 0x178   : > { %1914 = vmatprep.subr.bf16.mxu1 %v2445_v0 }
 0x17a   : > { %1085 = vrot.lane.b32.xlu1 %v851_v19, %s2447_s17  ;;  %964 = vrot.lane.b32.xlu0 %v851_v19, %s2448_s20  ;;  %v845_v41 = vpop.f32.mrf.mxu0 }
 0x17b   : > { %v846_v42 = vadd.f32 %v1802_v40, %v845_v41 }
 0x17c   : > { %v1900_v43 = vpop.f32.mrf.mxu0 }
 0x17d   : > { %v853_v44 = vpack.c.bf16 %v846_v42, %v846_v42 }
 0x17e   : > { %1204 = vrot.lane.b32.xlu1 %v851_v19, %s2449_s8  ;;  %1206 = vrot.lane.b32.xlu0 %v852_v16, %s2449_s8  ;;  %v848_v45 = vpop.f32.mrf.mxu0 }
 0x17f   : > { %1905 = vmatmul.mubr.msk.bf16.vlgmr.msra.gmra.mxu1 %vm854_vm2, %v851_v19  ;;  %v918_v46 = vsel %vm916_vm3, %v853_v44, 0 }
 0x180   : > { %1916 = vmatprep.mubr.msk.bf16.mxu1 %vm2446_vm0, %v2445_v0  ;;  %v1901_v47 = vpop.f32.mrf.mxu0  ;;  %1909 = vmatpush3.bf16.msra.mxu0 %v918_v46 }
 0x181   : > { %1920 = vmatprep.subr.bf16.mxu0 %v2445_v0 }
 0x1e8   : > { %v968_v26 = vpop.permute.xlu0 %967  ;;  %v1088_v28 = vpop.permute.xlu1 %1087 }
 0x1e9   : > { %v973_v27 = vsel %vm854_vm2, %v968_v26, 0  ;;  %v1093_v30 = vsel %vm854_vm2, %v1088_v28, 0 }
 0x1ea   : > { %1915 = vmatpush3.bf16.xpose.msra.mxu1 %v973_v27 }
 0x1eb   : > { %1926 = vmatprep.subr.bf16.mxu1 %v2445_v0 }
 0x1ec   : > { %v965_v29 = vpop.permute.xlu0 %964  ;;  %v1086_v32 = vpop.permute.xlu1 %1085 }
 0x1f0   : > { %v1207_v31 = vpop.permute.xlu0 %1206  ;;  %v1205_v34 = vpop.permute.xlu1 %1204 }
 0x1f1   : > { %1917 = vmatmul.mubr.msk.bf16.vlgmr.msra.gmra.mxu1 %vm854_vm2, %v965_v29  ;;  %v1212_v33 = vsel %vm854_vm2, %v1207_v31, 0 }
 0x1f2   : > { %1927 = vmatpush3.bf16.xpose.msra.mxu1 %v1093_v30  ;;  %1928 = vmatprep.mubr.msk.bf16.mxu1 %vm2446_vm0, %v2445_v0 }
 0x1f3   : > { %1938 = vmatprep.subr.bf16.mxu1 %v2445_v0 }
 0x1f9   : > { %1929 = vmatmul.mubr.msk.bf16.vlgmr.msra.gmra.mxu1 %vm854_vm2, %v1086_v32 }
 0x1fa   : > { %1939 = vmatpush3.bf16.xpose.msra.mxu1 %v1212_v33  ;;  %1940 = vmatprep.mubr.msk.bf16.mxu1 %vm2446_vm0, %v2445_v0 }
 0x1fb   : > { %1950 = vmatprep.subr.bf16.mxu1 %v2445_v0 }
 0x201   : > { %1941 = vmatmul.mubr.msk.bf16.vlgmr.msra.gmra.mxu1 %vm854_vm2, %v1205_v34 }
 0x202   : > { %1954 = vmatprep.mubr.msk.bf16.mxu1 %vm2446_vm0, %v2445_v0 }
 0x23f   : > { %v895_v35 = vpop.f32.mrf.mxu1 }
 0x240   : > { %v901_v36 = vsel %vm854_vm2, %v895_v35, -inf }
 0x241   : > { %902 = vmax.xlane.f32.xlu0 %v901_v36  ;;  %v1906_v37 = vpop.f32.mrf.mxu1 }
 0x243   : > { %v898_v38 = vpop.f32.mrf.mxu1 }
 0x245   : > { %v1907_v39 = vpop.f32.mrf.mxu1 }
 0x2b1   : > { %v1009_v48 = vpop.f32.mrf.mxu1 }
 0x2b2   : > { %v1015_v49 = vsel %vm854_vm2, %v1009_v48, -inf }
 0x2b3   : > { %1016 = vmax.xlane.f32.xlu1 %v1015_v49  ;;  %v1918_v50 = vpop.f32.mrf.mxu1 }
 0x2b5   : > { %v1012_v51 = vpop.f32.mrf.mxu1 }
 0x2b7   : > { %v1919_v52 = vpop.f32.mrf.mxu1 }
 0x2b9   : > { %v1129_v53 = vpop.f32.mrf.mxu1 }
 0x2ba   : > { %v1135_v54 = vsel %vm854_vm2, %v1129_v53, -inf }
 0x2bb   : > { %1136 = vmax.xlane.f32.xlu0 %v1135_v54  ;;  %v1930_v55 = vpop.f32.mrf.mxu1 }
 0x2bc   : > { %v2114_v55 = vld [vmem:[#allocation11] sm:$0xff]  }
 0x2bd   : > { %v1132_v56 = vpop.f32.mrf.mxu1 }
 0x2bf   : > { %v1931_v57 = vpop.f32.mrf.mxu1 }
 0x2c1   : > { %v1248_v58 = vpop.f32.mrf.mxu1 }
 0x2c2   : > { %v1254_v59 = vsel %vm854_vm2, %v1248_v58, -inf }
 0x2c3   : > { %1255 = vmax.xlane.f32.xlu0 %v1254_v59  ;;  %v1942_v60 = vpop.f32.mrf.mxu1 }
 0x2c5   : > { %v1251_v61 = vpop.f32.mrf.mxu1 }
 0x2c7   : > { %v1943_v62 = vpop.f32.mrf.mxu1 }
 0x2ca   : > { %v903_v63 = vpop.xlane.xlu0 %902 }
 0x2cb   : > { %v904_v1 = vsub.f32 %v895_v35, %v903_v63 }
 0x2cd   : > { %v905_v2 = vmul.f32 1.442695, %v904_v1 }
 0x2cf   : > { %2121 = vpow2.f32 %v905_v2 }
 0x2dc   : > { %v2122_v3 = vpop.eup %2121 }
 0x2dd   : > { %v907_v4 = vsel %vm854_vm2, %v2122_v3, 0.0 }
 0x2de   : > { %908 = vadd.xlane.f32.xlu1 %v907_v4 }
 0x2ef   : > { %1028 = vrot.lane.b32.xlu1 %v853_v44, %s2448_s20 }
 0x33c   : > { %v1017_v5 = vpop.xlane.xlu1 %1016 }
 0x33d   : > { %v1018_v7 = vsub.f32 %v1009_v48, %v1017_v5 }
 0x33f   : > { %v1019_v8 = vmul.f32 1.442695, %v1018_v7  ;;  %v1817_v7 = vld [vmem:[#allocation12] ss:$0 sm:$0xff] }
 0x341   : > { %2123 = vpow2.f32 %v1019_v8 }
 0x344   : > { %v1137_v9 = vpop.xlane.xlu0 %1136 }
 0x345   : > { %v1138_v10 = vsub.f32 %v1129_v53, %v1137_v9  ;;  %v2113_v53 = vld [vmem:[#allocation11 + $0x8] sm:$0xff]  }
 0x346   : > { %1951 = vmatpush3.bf16.msra.mxu1 %v2113_v53 }
 0x347   : > { %v1139_v11 = vmul.f32 1.442695, %v1138_v10  ;;  %1952 = vmatprep.subr.bf16.mxu1 %v2445_v0 }
 0x349   : > { %2125 = vpow2.f32 %v1139_v11 }
 0x34a   : > { %1953 = vmatpush3.bf16.msra.mxu1 %v2114_v55 }
 0x34b   : > { %1966 = vmatprep.subr.bf16.mxu1 %v2445_v0 }
 0x34c   : > { %v1256_v12 = vpop.xlane.xlu0 %1255 }
 0x34d   : > { %v1257_v13 = vsub.f32 %v1248_v58, %v1256_v12 }
 0x34e   : > { %v2124_v14 = vpop.eup %2123 }
 0x34f   : > { %v1258_v15 = vmul.f32 1.442695, %v1257_v13  ;;  %v1021_v16 = vsel %vm854_vm2, %v2124_v14, 0.0 }
 0x350   : > { %1022 = vadd.xlane.f32.xlu0 %v1021_v16 }
 0x351   : > { %2127 = vpow2.f32 %v1258_v15 }
 0x356   : > { %v2126_v17 = vpop.eup %2125 }
 0x357   : > { %v1141_v18 = vsel %vm854_vm2, %v2126_v17, 0.0 }
 0x358   : > { %1142 = vadd.xlane.f32.xlu1 %v1141_v18 }
 0x35e   : > { %v2128_v19 = vpop.eup %2127 }
 0x35f   : > { %v1260_v20 = vsel %vm854_vm2, %v2128_v19, 0.0 }
 0x360   : > { %1261 = vadd.xlane.f32.xlu0 %v1260_v20  ;;  %v2115_v20 = vld [vmem:[%s2926_s10 + $0x8] sm:$0xff]  }
 0x367   : > { %v909_v21 = vpop.xlane.xlu1 %908 }
 0x368   : > { %2129 = vrcp.f32 %v909_v21  ;;  %v2117_v21 = vld [vmem:[%s2928_s12 + $0x18] sm:$0xff]  }
 0x369   : > { %1266 = vrot.lane.b32.xlu1 %v853_v44, %s2449_s8 }
 0x36b   : > { %v1029_v23 = vpop.permute.xlu1 %1028 }
 0x36c   : > { %v1034_v26 = vsel %vm916_vm3, %v1029_v23, 0 }
 0x375   : > { %v2130_v22 = vpop.eup %2129 }
 0x376   : > { %1147 = vrot.lane.b32.xlu0 %v853_v44, %s2447_s17  ;;  %v911_v24 = vmul.f32 %v2130_v22, %v2122_v3  ;;  %v2118_v22 = vld [vmem:[%s2928_s12 + $0x10] sm:$0xff]   ;;  %s2979_s17 = sld [smem:[#allocation32_spill]] }
 0x378   : > { %v912_v25 = vpack.c.bf16 %v911_v24, %v911_v24 }
 0x37a   : > { %1911 = vmatmul.mubr.msk.bf16.vlgmr.msra.gmra.mxu0 %vm854_vm2, %v912_v25 }
 0x37b   : > { %1921 = vmatpush3.bf16.msra.mxu0 %v1034_v26  ;;  %1922 = vmatprep.mubr.msk.bf16.mxu0 %vm2446_vm0, %v2445_v0 }
 0x37c   : > { %1932 = vmatprep.subr.bf16.mxu0 %v2445_v0 }
 0x3d9   : > { %v1023_v27 = vpop.xlane.xlu0 %1022 }
 0x3da   : > { %2131 = vrcp.f32 %v1023_v27  ;;  %v1821_v27 = vld [vmem:[#allocation14] ss:$0 sm:$0xff] }
 0x3e1   : > { %v1143_v28 = vpop.xlane.xlu1 %1142 }
 0x3e2   : > { %2133 = vrcp.f32 %v1143_v28 }
 0x3e5   : > { %v1267_v37 = vpop.permute.xlu1 %1266 }
 0x3e6   : > { %v1272_v39 = vsel %vm916_vm3, %v1267_v37, 0 }
 0x3e7   : > { %v2132_v29 = vpop.eup %2131 }
 0x3e8   : > { %v1025_v30 = vmul.f32 %v2132_v29, %v2124_v14  ;;  %v1822_v29 = vld [vmem:[#allocation15] ss:$0 sm:$0xff] }
 0x3e9   : > { %v1262_v31 = vpop.xlane.xlu0 %1261 }
 0x3ea   : > { %2135 = vrcp.f32 %v1262_v31  ;;  %v1026_v32 = vpack.c.bf16 %v1025_v30, %v1025_v30 }
 0x3ec   : > { %1923 = vmatmul.mubr.msk.bf16.vlgmr.msra.gmra.mxu0 %vm854_vm2, %v1026_v32 }
 0x3ed   : > { %v1148_v33 = vpop.permute.xlu0 %1147  ;;  %1934 = vmatprep.mubr.msk.bf16.mxu0 %vm2446_vm0, %v2445_v0 }
 0x3ee   : > { %v1153_v34 = vsel %vm916_vm3, %v1148_v33, 0  ;;  %v2119_v33 = vld [vmem:[%s2928_s12 + $0x8] sm:$0xff]  }
 0x3ef   : > { %v2134_v35 = vpop.eup %2133  ;;  %1933 = vmatpush3.bf16.msra.mxu0 %v1153_v34  ;;  %v2120_v34 = vld [vmem:[%s2928_s12] sm:$0xff]  }
 0x3f0   : > { %1944 = vmatprep.subr.bf16.mxu0 %v2445_v0  ;;  %v1145_v36 = vmul.f32 %v2134_v35, %v2126_v17  ;;  %v1823_v35 = vld [vmem:[%s2927_s11] ss:$0 sm:$0xff] }
 0x3f2   : > { %v1146_v38 = vpack.c.bf16 %v1145_v36, %v1145_v36 }
 0x3f4   : > { %1935 = vmatmul.mubr.msk.bf16.vlgmr.msra.gmra.mxu0 %vm854_vm2, %v1146_v38 }
 0x3f5   : > { %1945 = vmatpush3.bf16.msra.mxu0 %v1272_v39  ;;  %1946 = vmatprep.mubr.msk.bf16.mxu0 %vm2446_vm0, %v2445_v0 }
 0x3f6   : > { %1958 = vmatprep.subr.bf16.mxu0 %v2445_v0 }
 0x3f7   : > { %v2136_v40 = vpop.eup %2135 }
 0x3f8   : > { %v1264_v41 = vmul.f32 %v2136_v40, %v2128_v19 }
 0x3fa   : > { %v1265_v42 = vpack.c.bf16 %v1264_v41, %v1264_v41 }
 0x3fc   : > { %1947 = vmatmul.mubr.msk.bf16.vlgmr.msra.gmra.mxu0 %vm854_vm2, %v1265_v42 }
 0x3fd   : > { %1962 = vmatprep.mubr.msk.bf16.mxu0 %vm2446_vm0, %v2445_v0  ;;  %1959 = vmatpush3.bf16.msra.mxu0 %v2115_v20 }
 0x3fe   : > { %1960 = vmatprep.subr.bf16.mxu0 %v2445_v0 }
 0x43a   : > { %v954_v43 = vpop.f32.mrf.mxu0 }
 0x43b   : > { %v960_v44 = vpack.c.bf16 %v954_v43, %v954_v43 }
 0x43c   : > { %v1912_v45 = vpop.f32.mrf.mxu0 }
 0x43d   : > { %962 = vst.msk [vmem:[#allocation2] sm:$0xf] %vm961_vm4, %v960_v44 }
 0x43e   : > { %v957_v46 = vpop.f32.mrf.mxu0 }
 0x440   : > { %v1913_v47 = vpop.f32.mrf.mxu0 }
 0x4ac   : > { %v1070_v48 = vpop.f32.mrf.mxu0 }
 0x4ad   : > { %v1839_v49 = vpack.c.bf16 %v1070_v48, %v1070_v48 }
 0x4ae   : > { %v1924_v50 = vpop.f32.mrf.mxu0 }
 0x4af   : > { %1080 = vrot.lane.b32.xlu1 %v1839_v49, %s2450_s29 }
 0x4b0   : > { %v1073_v51 = vpop.f32.mrf.mxu0 }
 0x4b2   : > { %v1925_v52 = vpop.f32.mrf.mxu0 }
 0x4b4   : > { %v1189_v54 = vpop.f32.mrf.mxu0 }
 0x4b5   : > { %v1840_v56 = vpack.c.bf16 %v1189_v54, %v1189_v54 }
 0x4b6   : > { %v1936_v57 = vpop.f32.mrf.mxu0 }
 0x4b7   : > { %1199 = vrot.lane.b32.xlu0 %v1840_v56, %s2451_s30 }
 0x4b8   : > { %v1192_v58 = vpop.f32.mrf.mxu0 }
 0x4ba   : > { %v1937_v59 = vpop.f32.mrf.mxu0 }
 0x4bb   : > { %v1833_v59 = vld [vmem:[%s2979_s17] ss:$0 sm:$0xff] }
 0x4bc   : > { %v1308_v60 = vpop.f32.mrf.mxu0 }
 0x4bd   : > { %v1841_v61 = vpack.c.bf16 %v1308_v60, %v1308_v60 }
 0x4be   : > { %v1948_v62 = vpop.f32.mrf.mxu0 }
 0x4bf   : > { %1318 = vrot.lane.b32.xlu1 %v1841_v61, %s2452_s19  ;;  %v1834_v61 = vld [vmem:[%s2980_s9] ss:$0 sm:$0xff]  ;;  %s2981_s19 = sld [smem:[#allocation34_spill]] }
 0x4c0   : > { %v1311_v63 = vpop.f32.mrf.mxu0 }
 0x4c2   : > { %v1949_v1 = vpop.f32.mrf.mxu0 }
 0x4c5   : > { %s1616_s14 = scalar_lea.hbm %s2981_s19, %s1836_s4 }
 0x521   : > { %v1081_v2 = vpop.permute.xlu1 %1080 }
 0x522   : > { %1084 = vst.msk [vmem:[#allocation2] sm:$0xf] %vm1083_vm5, %v1081_v2 }
 0x529   : > { %v1200_v3 = vpop.permute.xlu0 %1199 }
 0x52a   : > { %1203 = vst.msk [vmem:[#allocation2] sm:$0xf] %vm1202_vm6, %v1200_v3 }
 0x531   : > { %v1319_v4 = vpop.permute.xlu1 %1318 }
 0x532   : > { %1322 = vst.msk [vmem:[#allocation2] sm:$0xf] %vm1321_vm7, %v1319_v4 }
 0x539   : > { %v1323_v5 = vld [vmem:[#allocation2] sm:$0xf] }
 0x53a   : > { %1955 = vmatmul.mubr.msk.bf16.vlgmr.msra.gmra.mxu1 %vm676_vm1, %v1323_v5 }
 0x53b   : > { %1974 = vmatprep.mubr.msk.bf16.mxu1 %vm2446_vm0, %v2445_v0  ;;  %1967 = vmatpush3.bf16.msra.mxu1 %v2117_v21 }
 0x53c   : > { %1968 = vmatprep.subr.bf16.mxu1 %v2445_v0 }
 0x53f   : > { %1969 = vmatpush3.bf16.msra.mxu1 %v2118_v22 }
 0x540   : > { %1970 = vmatprep.subr.bf16.mxu1 %v2445_v0 }
 0x543   : > { %1971 = vmatpush3.bf16.msra.mxu1 %v2119_v33 }
 0x544   : > { %1972 = vmatprep.subr.bf16.mxu1 %v2445_v0  ;;  %v1827_v0 = vld [vmem:[%s2929_s13] ss:$0 sm:$0xff] }
 0x547   : > { %1973 = vmatpush3.bf16.msra.mxu1 %v2120_v34 }
 0x5fa   : > { %v1384_v8 = vpop.f32.mrf.mxu1 }
 0x5fb   : > { %v1385_v9 = vadd.f32 %v1817_v7, %v1384_v8 }
 0x5fc   : > { %v1956_v10 = vpop.f32.mrf.mxu1 }
 0x5fd   : > { %v1390_v11 = vadd.f32 %v1385_v9, %v2753_v6  ;;  %v2116_v6 = vld [vmem:[%s2926_s10] sm:$0xff]  }
 0x5fe   : > { %v1387_v12 = vpop.f32.mrf.mxu1  ;;  %1961 = vmatpush3.bf16.msra.mxu0 %v2116_v6 }
 0x5ff   : > { %v1393_v13 = vsel %vm676_vm1, %v1390_v11, 0.0 }
 0x600   : > { %1394 = vadd.xlane.f32.xlu0 %v1393_v13  ;;  %v1957_v14 = vpop.f32.mrf.mxu1 }
 0x689   : > { %v1395_v15 = vpop.xlane.xlu0 %1394 }
 0x68a   : > { %v1397_v16 = vmul.f32 0.03125, %v1395_v15 }
 0x68c   : > { %v1398_v17 = vsub.f32 %v1390_v11, %v1397_v16 }
 0x68e   : > { %v1399_v18 = vmul.f32 %v1398_v17, %v1398_v17 }
 0x690   : > { %v1400_v19 = vsel %vm676_vm1, %v1399_v18, 0.0 }
 0x691   : > { %1401 = vadd.xlane.f32.xlu1 %v1400_v19 }
 0x71a   : > { %v1402_v23 = vpop.xlane.xlu1 %1401 }
 0x71b   : > { %v1403_v24 = vmul.f32 0.03125, %v1402_v23 }
 0x71d   : > { %v1404_v25 = vadd.f32 1e-05, %v1403_v24 }
 0x71f   : > { %2137 = vrsqrt.f32 %v1404_v25 }
 0x72c   : > { %v2138_v26 = vpop.eup %2137 }
 0x72d   : > { %v1406_v28 = vmul.f32 %v2138_v26, %v1398_v17 }
 0x72f   : > { %v1413_v30 = vmul.f32 %v1821_v27, %v1406_v28 }
 0x731   : > { %v1420_v31 = vadd.f32 %v1822_v29, %v1413_v30 }
 0x733   : > { %v1421_v32 = vpack.c.bf16 %v1420_v31, %v1420_v31 }
 0x735   : > { %1963 = vmatmul.mubr.msk.bf16.vlgmr.msra.gmra.mxu0 %vm676_vm1, %v1421_v32 }
 0x7f5   : > { %v1482_v36 = vpop.f32.mrf.mxu0 }
 0x7f6   : > { %v1483_v37 = vadd.f32 %v1823_v35, %v1482_v36 }
 0x7f7   : > { %v1964_v38 = vpop.f32.mrf.mxu0 }
 0x7f8   : > { %v1488_v39 = vmax.f32 %v1483_v37, 0.0 }
 0x7f9   : > { %v1485_v40 = vpop.f32.mrf.mxu0 }
 0x7fa   : > { %v1489_v41 = vpack.c.bf16 %v1488_v39, %v1488_v39 }
 0x7fb   : > { %v1965_v42 = vpop.f32.mrf.mxu0 }
 0x7fc   : > { %1975 = vmatmul.mubr.msk.bf16.vlgmr.msra.gmra.mxu1 %vm1529_vm8, %v1489_v41 }
 0x8bc   : > { %v1567_v43 = vpop.f32.mrf.mxu1 }
 0x8bd   : > { %v1568_v44 = vadd.f32 %v1827_v0, %v1567_v43 }
 0x8be   : > { %v1976_v45 = vpop.f32.mrf.mxu1 }
 0x8bf   : > { %v1573_v46 = vadd.f32 %v1568_v44, %v1420_v31 }
 0x8c0   : > { %v1570_v47 = vpop.f32.mrf.mxu1 }
 0x8c1   : > { %v1576_v48 = vsel %vm676_vm1, %v1573_v46, 0.0 }
 0x8c2   : > { %1577 = vadd.xlane.f32.xlu0 %v1576_v48  ;;  %v1977_v49 = vpop.f32.mrf.mxu1 }
 0x94b   : > { %v1578_v50 = vpop.xlane.xlu0 %1577 }
 0x94c   : > { %v1579_v51 = vmul.f32 0.03125, %v1578_v50 }
 0x94e   : > { %v1580_v52 = vsub.f32 %v1573_v46, %v1579_v51 }
 0x950   : > { %v1581_v53 = vmul.f32 %v1580_v52, %v1580_v52 }
 0x952   : > { %v1582_v54 = vsel %vm676_vm1, %v1581_v53, 0.0 }
 0x953   : > { %1583 = vadd.xlane.f32.xlu0 %v1582_v54 }
 0x9dc   : > { %v1584_v55 = vpop.xlane.xlu0 %1583 }
 0x9dd   : > { %v1585_v56 = vmul.f32 0.03125, %v1584_v55 }
 0x9df   : > { %v1586_v57 = vadd.f32 1e-05, %v1585_v56 }
 0x9e1   : > { %2139 = vrsqrt.f32 %v1586_v57 }
 0x9ee   : > { %v2140_v58 = vpop.eup %2139 }
 0x9ef   : > { %v1588_v60 = vmul.f32 %v2140_v58, %v1580_v52 }
 0x9f1   : > { %v1595_v62 = vmul.f32 %v1833_v59, %v1588_v60 }
 0x9f3   : > { %v1602_v63 = vadd.f32 %v1834_v61, %v1595_v62 }
 0x9f5   : > { %1603 = vst.msk [vmem:[%s643_s5] sm:$0xff] %vm676_vm1, %v1602_v63 }
 0x9f6   : > { %2364 = shalt.err (!%p2361_p13)
}
 0x9f7   : > { %s2365_s17 = scalar_lea.hbm %s1616_s14, 128  ;;  %s2369_s8 = scalar_lea.hbm %s2981_s19, 256 }
 0x9f8   : > { %p2366_p7 = scmp.ne.s32.totalorder %s1616_s14, %s2365_s17  ;;  %p2370_p5 = scmp.lt.s32.totalorder %s1616_s14, %s2981_s19 }
 0x9f9   : > { %p2371_p8 = scmp.lt.s32.totalorder %s2369_s8, %s2365_s17 }
 0x9fa   : > { %p2367_p0 = pnand %p2366_p7, %p2982_p1 }
 0x9fb   : > { %p2372_p10 = por %p2371_p8, %p2370_p5 }
 0x9fc   : > { %p2368_p2 = pneg %p2367_p0 }
 0x9fe   : > { %p2373_p11 = pnand %p2372_p10, %p2368_p2 }
 0xa00   : > { %2376 = shalt.err (!%p2373_p11)
}
 0xa01   : > { %2008 = dma.vmem_to_hbm [thread:$0]  (%p2982_p1), %s1619_s28, 128, %s1616_s14, %s1605_s2  }
 0xa02 PF: > { %s1630_s5 = sand.u32 1, %s2419_s21   ;;  %p2983_p3 = scmp.ne.s32.totalorder %s2966_s16, 0 }
 0xa03   : > { %p2984_p4 = scmp.ge.s32.totalorder %s2431_s24, 2  ;;  %s1631_s29 = scalar_lea.sflag [#allocation5], %s1630_s5 }
 0xa05   : > { %p2037_p6 = pnand %p2984_p4, %p2983_p3 }
 0xa07   : > { %p2038_p9 = pneg %p2037_p6 }
 0xa09   : > { %2414 = dma.done.wait (%p2038_p9), %s1631_s29, 128  }
 0xa0a   : > { %2416 = vsyncadd (%p2038_p9), %s1631_s29, 4294967168  ;;  %p33_p12 = scmp.ge.s32.totalorder %s2651_s0, 4   ;;  %s2985_s21 = smov %s2423_s22 }
 0xa0b   : > { %s2986_s22 = smov %s2427_s23  ;;  %s2987_s23 = smov %s2663_s25 }
 0xa0c   : > { %s2988_s24 = smov %s2651_s0  ;;  %35 = sbr.rel (!%p33_p12) target bundleno = 21 (0x15), region = 162 }
 0xa11   :  { %1636 = vsyncpa [#allocation4], 1 }
 0xa12   :  { %1638 = vsyncpa [#allocation4 + $0x1], 1 }
 0xa13   :  { %1639 = vsyncpa [#allocation7], 1 }
 0xa14   :  { %1640 = vsyncpa [#allocation10], 1 }
 0xa15   :  { %1641 = vsyncpa [#allocation13], 1 }
 0xa16   :  { %1642 = vsyncpa [#allocation16], 1 }
 0xa17   :  { %1643 = vsyncpa [#allocation5], 1 }
 0xa18   :  { %1645 = vsyncpa [#allocation5 + $0x1], 1 }

</bundles_post_ra>
